<compile_context>
chip_gen: v6e
topology: v6e:2x2x1
jax: 0.10.0
libtpu: 0.0.40
codegen_flags: <defaults>
</compile_context>

<pallas_src>
import functools

import jax
import jax.numpy as jnp
import numpy as np
from jax.experimental import pallas as pl


# ----------------------------------------------------------------------------
# Fused Pallas kernel: all LSTM layers/directions + FC + activation
# ----------------------------------------------------------------------------
def _fused_lstm_kernel(x_ref, wih_ref, whh_ref, b_ref, fcw_ref, fcb_ref, out_ref, *,
                       num_layers, D, T, Bp, H, max_in, activation):
    """Ref layout (all resident in VMEM, whole-array refs):
      x_ref   : (T*Bp, max_in)        f32   time-major, batch- and feature-padded input
      wih_ref : (L*max_in, D*4H)      bf16  per layer: [W_ih_fwd^T | W_ih_bwd^T], rows padded
      whh_ref : (L*D*H,    D*4H)      bf16  per layer: blockdiag(W_hh_fwd^T, W_hh_bwd^T)
      b_ref   : (L,        D*4H)      f32   per layer: [b_fwd | b_bwd] (b_ih + b_hh folded)
      fcw_ref : (D*H, O)              bf16
      fcb_ref : (1, O)                f32
      out_ref : (Bp, O)               f32
    Gate order within each direction's 4H block is PyTorch's (i, f, g, o).
    """
    G = 4 * H
    DH = D * H

    in2d = x_ref[...]                                    # (T*Bp, max_in) f32
    last = None

    for layer in range(num_layers):
        r0 = layer * max_in
        wih = wih_ref[r0:r0 + max_in, :]                 # (max_in, D*4H) bf16
        whh = whh_ref[layer * DH:(layer + 1) * DH, :]    # (DH,     D*4H) bf16
        b = b_ref[layer:layer + 1, :]                    # (1,      D*4H) f32

        # Hoisted input projection: ONE tall bf16 MXU matmul per layer (both directions).
        gates_in = jnp.dot(in2d.astype(jnp.bfloat16), wih,
                           preferred_element_type=jnp.float32) + b   # (T*Bp, D*4H) f32

        # Interleaved fwd/bwd recurrence: ONE (Bp, DH) @ (DH, D*4H) bf16 matmul per step
        # drives both directions (block-diagonal W_hh) -> half the serial MXU pushes.
        h_state = jnp.zeros((Bp, DH), jnp.float32)       # [h_fwd | h_bwd]
        c_dirs = [jnp.zeros((Bp, H), jnp.float32) for _ in range(D)]
        h_seq = [[None] * T for _ in range(D)]           # per-direction, per-time h

        for s in range(T):
            g_rec = jnp.dot(h_state.astype(jnp.bfloat16), whh,
                            preferred_element_type=jnp.float32)      # (Bp, D*4H) f32
            new_h = []
            for d in range(D):
                t = s if d == 0 else T - 1 - s
                gd = (g_rec[:, d * G:(d + 1) * G]
                      + gates_in[t * Bp:(t + 1) * Bp, d * G:(d + 1) * G])   # (Bp, 4H)
                # Nonlinearities on the full 4H-wide vreg (EUP has slack); slice results.
                sig = jax.nn.sigmoid(gd)
                th = jnp.tanh(gd)
                i_g = sig[:, 0 * H:1 * H]
                f_g = sig[:, 1 * H:2 * H]
                g_g = th[:, 2 * H:3 * H]
                o_g = sig[:, 3 * H:4 * H]
                c_dirs[d] = f_g * c_dirs[d] + i_g * g_g               # f32 cell math
                hd = o_g * jnp.tanh(c_dirs[d])
                h_seq[d][t] = hd
                new_h.append(hd)
            h_state = new_h[0] if D == 1 else jnp.concatenate(new_h, axis=-1)

        # Last-timestep output of this layer (used by the FC epilogue on the final layer).
        if D == 1:
            last = h_seq[0][T - 1]
        else:
            last = jnp.concatenate([h_seq[0][T - 1], h_seq[1][T - 1]], axis=-1)

        # Next layer's input assembled entirely in vregs (no per-step VMEM stores).
        if layer + 1 < num_layers:
            if D == 1:
                rows = h_seq[0]
            else:
                rows = [jnp.concatenate([h_seq[0][t], h_seq[1][t]], axis=-1)
                        for t in range(T)]
            in2d = jnp.concatenate(rows, axis=0)          # (T*Bp, DH) f32
            if DH < max_in:                               # only if input_size > D*H
                in2d = jnp.concatenate(
                    [in2d, jnp.zeros((T * Bp, max_in - DH), jnp.float32)], axis=-1)

    # Fused FC + activation epilogue on out[:, -1, :].
    y = jnp.dot(last.astype(jnp.bfloat16), fcw_ref[...],
                preferred_element_type=jnp.float32) + fcb_ref[...]
    if activation == "relu":
        y = jnp.maximum(y, 0.0)
    else:  # 'tanh'
        y = jnp.tanh(y)
    out_ref[...] = y


# ----------------------------------------------------------------------------
# Wrapper: host-side packing + single pallas_call
# ----------------------------------------------------------------------------
def lstm_forward(x, params, *, num_layers, hidden_size, bidirectional, activation):
    """Matches LSTM.forward: x is (B, T, I) batch-first; returns (B, output_size)."""
    B, T, I = x.shape
    D = 2 if bidirectional else 1
    H = hidden_size
    G = 4 * H
    DG = D * G
    DH = D * H
    Bp = ((B + 7) // 8) * 8                          # pad batch to a full sublane tile
    max_in = max(I, DH)                              # common padded K for all layers

    # Time-major, batch- and feature-padded input: (T*Bp, max_in).
    xt = jnp.transpose(x, (1, 0, 2))                 # (T, B, I)
    xt = jnp.pad(xt, ((0, 0), (0, Bp - B), (0, max_in - I)))
    x2d = xt.reshape(T * Bp, max_in).astype(jnp.float32)

    # Pack all per-(layer, direction) weights into 3 contiguous arrays (3 DMAs vs 12).
    wih_blocks, whh_blocks, b_rows = [], [], []
    for layer in range(num_layers):
        in_sz = I if layer == 0 else DH
        wih_l = jnp.zeros((max_in, DG), jnp.float32)
        whh_l = jnp.zeros((DH, DG), jnp.float32)     # block-diagonal across directions
        b_l = jnp.zeros((1, DG), jnp.float32)
        for d in range(D):
            wih_T, whh_T, b = params["lstm"][(layer, d)]   # PyTorch gate order (i,f,g,o)
            wih_l = wih_l.at[:in_sz, d * G:(d + 1) * G].set(wih_T)
            whh_l = whh_l.at[d * H:(d + 1) * H, d * G:(d + 1) * G].set(whh_T)
            b_l = b_l.at[:, d * G:(d + 1) * G].set(b)
        wih_blocks.append(wih_l)
        whh_blocks.append(whh_l)
        b_rows.append(b_l)
    wih_pack = jnp.concatenate(wih_blocks, axis=0).astype(jnp.bfloat16)  # (L*max_in, DG)
    whh_pack = jnp.concatenate(whh_blocks, axis=0).astype(jnp.bfloat16)  # (L*DH,     DG)
    b_pack = jnp.concatenate(b_rows, axis=0)                             # (L,        DG)

    fc_w = params["fc_w_T"].astype(jnp.bfloat16)     # (DH, O) bf16
    fc_b = params["fc_b"]                            # (1, O)  f32
    O = fc_w.shape[1]

    kernel = functools.partial(_fused_lstm_kernel, num_layers=num_layers, D=D,
                               T=T, Bp=Bp, H=H, max_in=max_in, activation=activation)
    out = pl.pallas_call(
        kernel,
        out_shape=jax.ShapeDtypeStruct((Bp, O), jnp.float32),
    )(x2d, wih_pack, whh_pack, b_pack, fc_w, fc_b)
    return out[:B]


# ----------------------------------------------------------------------------
# Deterministic parameter init (same shapes / init range as nn.LSTM + nn.Linear)
# ----------------------------------------------------------------------------
def init_params(key, input_size, hidden_size, num_layers, output_size, bidirectional):
    D = 2 if bidirectional else 1
    k = 1.0 / np.sqrt(hidden_size)
    params = {"lstm": {}}
    for layer in range(num_layers):
        in_sz = input_size if layer == 0 else hidden_size * D
        for d in range(D):
            key, k1, k2, k3, k4 = jax.random.split(key, 5)
            w_ih = jax.random.uniform(k1, (4 * hidden_size, in_sz),
                                      minval=-k, maxval=k, dtype=jnp.float32)
            w_hh = jax.random.uniform(k2, (4 * hidden_size, hidden_size),
                                      minval=-k, maxval=k, dtype=jnp.float32)
            b_ih = jax.random.uniform(k3, (4 * hidden_size,),
                                      minval=-k, maxval=k, dtype=jnp.float32)
            b_hh = jax.random.uniform(k4, (4 * hidden_size,),
                                      minval=-k, maxval=k, dtype=jnp.float32)
            # stored transposed, PyTorch gate order (i, f, g, o), b_ih + b_hh folded
            params["lstm"][(layer, d)] = (w_ih.T, w_hh.T, (b_ih + b_hh)[None, :])
    fc_in = hidden_size * D
    kf = 1.0 / np.sqrt(fc_in)
    key, k1, k2 = jax.random.split(key, 3)
    fc_w = jax.random.uniform(k1, (output_size, fc_in),
                              minval=-kf, maxval=kf, dtype=jnp.float32)
    fc_b = jax.random.uniform(k2, (output_size,),
                              minval=-kf, maxval=kf, dtype=jnp.float32)
    params["fc_w_T"] = fc_w.T
    params["fc_b"] = fc_b[None, :]
    return params


# ----------------------------------------------------------------------------
# Pure-JAX f32 reference (mirrors PyTorch nn.LSTM semantics) for correctness check
# ----------------------------------------------------------------------------
def ref_forward(x, params, *, num_layers, hidden_size, bidirectional, activation):
    B, T, _ = x.shape
    D = 2 if bidirectional else 1
    H = hidden_size
    layer_in = x
    for layer in range(num_layers):
        outs = []
        for d in range(D):
            wih_T, whh_T, b = params["lstm"][(layer, d)]
            h = jnp.zeros((B, H), jnp.float32)
            c = jnp.zeros((B, H), jnp.float32)
            hs = [None] * T
            order = range(T - 1, -1, -1) if d == 1 else range(T)
            for t in order:
                xt = layer_in[:, t, :]
                gates = xt @ wih_T + h @ whh_T + b
                i = jax.nn.sigmoid(gates[:, 0 * H:1 * H])
                f = jax.nn.sigmoid(gates[:, 1 * H:2 * H])
                g = jnp.tanh(gates[:, 2 * H:3 * H])
                o = jax.nn.sigmoid(gates[:, 3 * H:4 * H])
                c = f * c + i * g
                h = o * jnp.tanh(c)
                hs[t] = h
            outs.append(jnp.stack(hs, axis=1))
        layer_in = outs[0] if D == 1 else jnp.concatenate(outs, axis=-1)
    y = layer_in[:, -1, :] @ params["fc_w_T"] + params["fc_b"]
    return jnp.maximum(y, 0.0) if activation == "relu" else jnp.tanh(y)


# ----------------------------------------------------------------------------
if __name__ == "__main__":
    # Module config (small shapes consistent with the forward pass)
    input_size, hidden_size, num_layers, output_size = 8, 32, 2, 8
    activation, bidirectional = "tanh", True
    batch, seq = 2, 8

    key = jax.random.PRNGKey(0)
    key, pkey, xkey = jax.random.split(key, 3)
    params = init_params(pkey, input_size, hidden_size, num_layers,
                         output_size, bidirectional)
    x = jax.random.normal(xkey, (batch, seq, input_size), dtype=jnp.float32)

    out = lstm_forward(x, params, num_layers=num_layers, hidden_size=hidden_size,
                       bidirectional=bidirectional, activation=activation)
    out = jax.block_until_ready(out)

    ref = ref_forward(x, params, num_layers=num_layers, hidden_size=hidden_size,
                      bidirectional=bidirectional, activation=activation)
    # bf16 MXU operands (f32 accumulate) -> loosened tolerance vs. the pure-f32 reference.
    np.testing.assert_allclose(np.asarray(out), np.asarray(ref),
                               rtol=5e-2, atol=5e-2)
    print("KERNEL_OK")
</pallas_src>

<mosaic_0001>
module attributes {stable_mosaic.version = 11 : i64} {
  func.func @_fused_lstm_kernel(%arg0: memref<64x64xf32, #tpu.memory_space<vmem>>, %arg1: memref<128x256xbf16, #tpu.memory_space<vmem>>, %arg2: memref<128x256xbf16, #tpu.memory_space<vmem>>, %arg3: memref<2x256xf32, #tpu.memory_space<vmem>>, %arg4: memref<64x8xbf16, #tpu.memory_space<vmem>>, %arg5: memref<1x8xf32, #tpu.memory_space<vmem>>, %arg6: memref<8x8xf32, #tpu.memory_space<vmem>>) attributes {dimension_semantics = [], scalar_prefetch = 0 : i64, scratch_operands = 0 : i64, tpu.core_type = #tpu.core_type<tc>} {
    %c0 = arith.constant 0 : index
    %c0_0 = arith.constant 0 : index
    %0 = vector.load %arg0[%c0, %c0_0] : memref<64x64xf32, #tpu.memory_space<vmem>>, vector<64x64xf32>
    %c0_1 = arith.constant 0 : index
    %c0_2 = arith.constant 0 : index
    %1 = vector.load %arg1[%c0_1, %c0_2] : memref<128x256xbf16, #tpu.memory_space<vmem>>, vector<64x256xbf16>
    %c0_3 = arith.constant 0 : index
    %c0_4 = arith.constant 0 : index
    %2 = vector.load %arg2[%c0_3, %c0_4] : memref<128x256xbf16, #tpu.memory_space<vmem>>, vector<64x256xbf16>
    %c0_5 = arith.constant 0 : index
    %c0_6 = arith.constant 0 : index
    %3 = vector.load %arg3[%c0_5, %c0_6] : memref<2x256xf32, #tpu.memory_space<vmem>>, vector<1x256xf32>
    %4 = arith.truncf %0 : vector<64x64xf32> to vector<64x64xbf16>
    %cst = arith.constant dense<0.000000e+00> : vector<64x256xf32>
    %5 = tpu.matmul %4, %1, %cst {dimension_numbers = #tpu.dot_dimension_numbers<[1], [0], [0], [1], [0, 0, 1, 1], [], []>} : vector<64x64xbf16>, vector<64x256xbf16>, vector<64x256xf32> -> vector<64x256xf32>
    %6 = vector.broadcast %3 : vector<1x256xf32> to vector<64x256xf32>
    %7 = arith.addf %5, %6 : vector<64x256xf32>
    %cst_7 = arith.constant 0.000000e+00 : f32
    %8 = vector.broadcast %cst_7 : f32 to vector<8x64xf32>
    %cst_8 = arith.constant 0.000000e+00 : f32
    %9 = vector.broadcast %cst_8 : f32 to vector<8x32xf32>
    %cst_9 = arith.constant 0.000000e+00 : f32
    %10 = vector.broadcast %cst_9 : f32 to vector<8x32xf32>
    %11 = arith.truncf %8 : vector<8x64xf32> to vector<8x64xbf16>
    %cst_10 = arith.constant dense<0.000000e+00> : vector<8x256xf32>
    %12 = tpu.matmul %11, %2, %cst_10 {dimension_numbers = #tpu.dot_dimension_numbers<[1], [0], [0], [1], [0, 0, 1, 1], [], []>} : vector<8x64xbf16>, vector<64x256xbf16>, vector<8x256xf32> -> vector<8x256xf32>
    %13 = vector.extract_strided_slice %12 {offsets = [0, 0], sizes = [8, 128], strides = [1, 1]} : vector<8x256xf32> to vector<8x128xf32>
    %14 = vector.extract_strided_slice %7 {offsets = [0, 0], sizes = [8, 128], strides = [1, 1]} : vector<64x256xf32> to vector<8x128xf32>
    %15 = arith.addf %13, %14 : vector<8x128xf32>
    %16 = arith.negf %15 : vector<8x128xf32>
    %17 = math.exp %16 : vector<8x128xf32>
    %cst_11 = arith.constant 1.000000e+00 : f32
    %18 = vector.broadcast %cst_11 : f32 to vector<8x128xf32>
    %19 = arith.addf %18, %17 : vector<8x128xf32>
    %20 = arith.divf %18, %19 : vector<8x128xf32>
    %21 = math.tanh %15 : vector<8x128xf32>
    %22 = vector.extract_strided_slice %20 {offsets = [0, 0], sizes = [8, 32], strides = [1, 1]} : vector<8x128xf32> to vector<8x32xf32>
    %23 = vector.extract_strided_slice %20 {offsets = [0, 32], sizes = [8, 32], strides = [1, 1]} : vector<8x128xf32> to vector<8x32xf32>
    %24 = vector.extract_strided_slice %21 {offsets = [0, 64], sizes = [8, 32], strides = [1, 1]} : vector<8x128xf32> to vector<8x32xf32>
    %25 = vector.extract_strided_slice %20 {offsets = [0, 96], sizes = [8, 32], strides = [1, 1]} : vector<8x128xf32> to vector<8x32xf32>
    %26 = arith.mulf %23, %9 : vector<8x32xf32>
    %27 = arith.mulf %22, %24 : vector<8x32xf32>
    %28 = arith.addf %26, %27 : vector<8x32xf32>
    %29 = math.tanh %28 : vector<8x32xf32>
    %30 = arith.mulf %25, %29 : vector<8x32xf32>
    %31 = vector.extract_strided_slice %12 {offsets = [0, 128], sizes = [8, 128], strides = [1, 1]} : vector<8x256xf32> to vector<8x128xf32>
    %32 = vector.extract_strided_slice %7 {offsets = [56, 128], sizes = [8, 128], strides = [1, 1]} : vector<64x256xf32> to vector<8x128xf32>
    %33 = arith.addf %31, %32 : vector<8x128xf32>
    %34 = arith.negf %33 : vector<8x128xf32>
    %35 = math.exp %34 : vector<8x128xf32>
    %cst_12 = arith.constant 1.000000e+00 : f32
    %36 = vector.broadcast %cst_12 : f32 to vector<8x128xf32>
    %37 = arith.addf %36, %35 : vector<8x128xf32>
    %38 = arith.divf %36, %37 : vector<8x128xf32>
    %39 = math.tanh %33 : vector<8x128xf32>
    %40 = vector.extract_strided_slice %38 {offsets = [0, 0], sizes = [8, 32], strides = [1, 1]} : vector<8x128xf32> to vector<8x32xf32>
    %41 = vector.extract_strided_slice %38 {offsets = [0, 32], sizes = [8, 32], strides = [1, 1]} : vector<8x128xf32> to vector<8x32xf32>
    %42 = vector.extract_strided_slice %39 {offsets = [0, 64], sizes = [8, 32], strides = [1, 1]} : vector<8x128xf32> to vector<8x32xf32>
    %43 = vector.extract_strided_slice %38 {offsets = [0, 96], sizes = [8, 32], strides = [1, 1]} : vector<8x128xf32> to vector<8x32xf32>
    %44 = arith.mulf %41, %10 : vector<8x32xf32>
    %45 = arith.mulf %40, %42 : vector<8x32xf32>
    %46 = arith.addf %44, %45 : vector<8x32xf32>
    %47 = math.tanh %46 : vector<8x32xf32>
    %48 = arith.mulf %43, %47 : vector<8x32xf32>
    %49 = tpu.concatenate %30, %48 in 1 : vector<8x32xf32>, vector<8x32xf32> -> vector<8x64xf32>
    %50 = arith.truncf %49 : vector<8x64xf32> to vector<8x64xbf16>
    %cst_13 = arith.constant dense<0.000000e+00> : vector<8x256xf32>
    %51 = tpu.matmul %50, %2, %cst_13 {dimension_numbers = #tpu.dot_dimension_numbers<[1], [0], [0], [1], [0, 0, 1, 1], [], []>} : vector<8x64xbf16>, vector<64x256xbf16>, vector<8x256xf32> -> vector<8x256xf32>
    %52 = vector.extract_strided_slice %51 {offsets = [0, 0], sizes = [8, 128], strides = [1, 1]} : vector<8x256xf32> to vector<8x128xf32>
    %53 = vector.extract_strided_slice %7 {offsets = [8, 0], sizes = [8, 128], strides = [1, 1]} : vector<64x256xf32> to vector<8x128xf32>
    %54 = arith.addf %52, %53 : vector<8x128xf32>
    %55 = arith.negf %54 : vector<8x128xf32>
    %56 = math.exp %55 : vector<8x128xf32>
    %cst_14 = arith.constant 1.000000e+00 : f32
    %57 = vector.broadcast %cst_14 : f32 to vector<8x128xf32>
    %58 = arith.addf %57, %56 : vector<8x128xf32>
    %59 = arith.divf %57, %58 : vector<8x128xf32>
    %60 = math.tanh %54 : vector<8x128xf32>
    %61 = vector.extract_strided_slice %59 {offsets = [0, 0], sizes = [8, 32], strides = [1, 1]} : vector<8x128xf32> to vector<8x32xf32>
    %62 = vector.extract_strided_slice %59 {offsets = [0, 32], sizes = [8, 32], strides = [1, 1]} : vector<8x128xf32> to vector<8x32xf32>
    %63 = vector.extract_strided_slice %60 {offsets = [0, 64], sizes = [8, 32], strides = [1, 1]} : vector<8x128xf32> to vector<8x32xf32>
    %64 = vector.extract_strided_slice %59 {offsets = [0, 96], sizes = [8, 32], strides = [1, 1]} : vector<8x128xf32> to vector<8x32xf32>
    %65 = arith.mulf %62, %28 : vector<8x32xf32>
    %66 = arith.mulf %61, %63 : vector<8x32xf32>
    %67 = arith.addf %65, %66 : vector<8x32xf32>
    %68 = math.tanh %67 : vector<8x32xf32>
    %69 = arith.mulf %64, %68 : vector<8x32xf32>
    %70 = vector.extract_strided_slice %51 {offsets = [0, 128], sizes = [8, 128], strides = [1, 1]} : vector<8x256xf32> to vector<8x128xf32>
    %71 = vector.extract_strided_slice %7 {offsets = [48, 128], sizes = [8, 128], strides = [1, 1]} : vector<64x256xf32> to vector<8x128xf32>
    %72 = arith.addf %70, %71 : vector<8x128xf32>
    %73 = arith.negf %72 : vector<8x128xf32>
    %74 = math.exp %73 : vector<8x128xf32>
    %cst_15 = arith.constant 1.000000e+00 : f32
    %75 = vector.broadcast %cst_15 : f32 to vector<8x128xf32>
    %76 = arith.addf %75, %74 : vector<8x128xf32>
    %77 = arith.divf %75, %76 : vector<8x128xf32>
    %78 = math.tanh %72 : vector<8x128xf32>
    %79 = vector.extract_strided_slice %77 {offsets = [0, 0], sizes = [8, 32], strides = [1, 1]} : vector<8x128xf32> to vector<8x32xf32>
    %80 = vector.extract_strided_slice %77 {offsets = [0, 32], sizes = [8, 32], strides = [1, 1]} : vector<8x128xf32> to vector<8x32xf32>
    %81 = vector.extract_strided_slice %78 {offsets = [0, 64], sizes = [8, 32], strides = [1, 1]} : vector<8x128xf32> to vector<8x32xf32>
    %82 = vector.extract_strided_slice %77 {offsets = [0, 96], sizes = [8, 32], strides = [1, 1]} : vector<8x128xf32> to vector<8x32xf32>
    %83 = arith.mulf %80, %46 : vector<8x32xf32>
    %84 = arith.mulf %79, %81 : vector<8x32xf32>
    %85 = arith.addf %83, %84 : vector<8x32xf32>
    %86 = math.tanh %85 : vector<8x32xf32>
    %87 = arith.mulf %82, %86 : vector<8x32xf32>
    %88 = tpu.concatenate %69, %87 in 1 : vector<8x32xf32>, vector<8x32xf32> -> vector<8x64xf32>
    %89 = arith.truncf %88 : vector<8x64xf32> to vector<8x64xbf16>
    %cst_16 = arith.constant dense<0.000000e+00> : vector<8x256xf32>
    %90 = tpu.matmul %89, %2, %cst_16 {dimension_numbers = #tpu.dot_dimension_numbers<[1], [0], [0], [1], [0, 0, 1, 1], [], []>} : vector<8x64xbf16>, vector<64x256xbf16>, vector<8x256xf32> -> vector<8x256xf32>
    %91 = vector.extract_strided_slice %90 {offsets = [0, 0], sizes = [8, 128], strides = [1, 1]} : vector<8x256xf32> to vector<8x128xf32>
    %92 = vector.extract_strided_slice %7 {offsets = [16, 0], sizes = [8, 128], strides = [1, 1]} : vector<64x256xf32> to vector<8x128xf32>
    %93 = arith.addf %91, %92 : vector<8x128xf32>
    %94 = arith.negf %93 : vector<8x128xf32>
    %95 = math.exp %94 : vector<8x128xf32>
    %cst_17 = arith.constant 1.000000e+00 : f32
    %96 = vector.broadcast %cst_17 : f32 to vector<8x128xf32>
    %97 = arith.addf %96, %95 : vector<8x128xf32>
    %98 = arith.divf %96, %97 : vector<8x128xf32>
    %99 = math.tanh %93 : vector<8x128xf32>
    %100 = vector.extract_strided_slice %98 {offsets = [0, 0], sizes = [8, 32], strides = [1, 1]} : vector<8x128xf32> to vector<8x32xf32>
    %101 = vector.extract_strided_slice %98 {offsets = [0, 32], sizes = [8, 32], strides = [1, 1]} : vector<8x128xf32> to vector<8x32xf32>
    %102 = vector.extract_strided_slice %99 {offsets = [0, 64], sizes = [8, 32], strides = [1, 1]} : vector<8x128xf32> to vector<8x32xf32>
    %103 = vector.extract_strided_slice %98 {offsets = [0, 96], sizes = [8, 32], strides = [1, 1]} : vector<8x128xf32> to vector<8x32xf32>
    %104 = arith.mulf %101, %67 : vector<8x32xf32>
    %105 = arith.mulf %100, %102 : vector<8x32xf32>
    %106 = arith.addf %104, %105 : vector<8x32xf32>
    %107 = math.tanh %106 : vector<8x32xf32>
    %108 = arith.mulf %103, %107 : vector<8x32xf32>
    %109 = vector.extract_strided_slice %90 {offsets = [0, 128], sizes = [8, 128], strides = [1, 1]} : vector<8x256xf32> to vector<8x128xf32>
    %110 = vector.extract_strided_slice %7 {offsets = [40, 128], sizes = [8, 128], strides = [1, 1]} : vector<64x256xf32> to vector<8x128xf32>
    %111 = arith.addf %109, %110 : vector<8x128xf32>
    %112 = arith.negf %111 : vector<8x128xf32>
    %113 = math.exp %112 : vector<8x128xf32>
    %cst_18 = arith.constant 1.000000e+00 : f32
    %114 = vector.broadcast %cst_18 : f32 to vector<8x128xf32>
    %115 = arith.addf %114, %113 : vector<8x128xf32>
    %116 = arith.divf %114, %115 : vector<8x128xf32>
    %117 = math.tanh %111 : vector<8x128xf32>
    %118 = vector.extract_strided_slice %116 {offsets = [0, 0], sizes = [8, 32], strides = [1, 1]} : vector<8x128xf32> to vector<8x32xf32>
    %119 = vector.extract_strided_slice %116 {offsets = [0, 32], sizes = [8, 32], strides = [1, 1]} : vector<8x128xf32> to vector<8x32xf32>
    %120 = vector.extract_strided_slice %117 {offsets = [0, 64], sizes = [8, 32], strides = [1, 1]} : vector<8x128xf32> to vector<8x32xf32>
    %121 = vector.extract_strided_slice %116 {offsets = [0, 96], sizes = [8, 32], strides = [1, 1]} : vector<8x128xf32> to vector<8x32xf32>
    %122 = arith.mulf %119, %85 : vector<8x32xf32>
    %123 = arith.mulf %118, %120 : vector<8x32xf32>
    %124 = arith.addf %122, %123 : vector<8x32xf32>
    %125 = math.tanh %124 : vector<8x32xf32>
    %126 = arith.mulf %121, %125 : vector<8x32xf32>
    %127 = tpu.concatenate %108, %126 in 1 : vector<8x32xf32>, vector<8x32xf32> -> vector<8x64xf32>
    %128 = arith.truncf %127 : vector<8x64xf32> to vector<8x64xbf16>
    %cst_19 = arith.constant dense<0.000000e+00> : vector<8x256xf32>
    %129 = tpu.matmul %128, %2, %cst_19 {dimension_numbers = #tpu.dot_dimension_numbers<[1], [0], [0], [1], [0, 0, 1, 1], [], []>} : vector<8x64xbf16>, vector<64x256xbf16>, vector<8x256xf32> -> vector<8x256xf32>
    %130 = vector.extract_strided_slice %129 {offsets = [0, 0], sizes = [8, 128], strides = [1, 1]} : vector<8x256xf32> to vector<8x128xf32>
    %131 = vector.extract_strided_slice %7 {offsets = [24, 0], sizes = [8, 128], strides = [1, 1]} : vector<64x256xf32> to vector<8x128xf32>
    %132 = arith.addf %130, %131 : vector<8x128xf32>
    %133 = arith.negf %132 : vector<8x128xf32>
    %134 = math.exp %133 : vector<8x128xf32>
    %cst_20 = arith.constant 1.000000e+00 : f32
    %135 = vector.broadcast %cst_20 : f32 to vector<8x128xf32>
    %136 = arith.addf %135, %134 : vector<8x128xf32>
    %137 = arith.divf %135, %136 : vector<8x128xf32>
    %138 = math.tanh %132 : vector<8x128xf32>
    %139 = vector.extract_strided_slice %137 {offsets = [0, 0], sizes = [8, 32], strides = [1, 1]} : vector<8x128xf32> to vector<8x32xf32>
    %140 = vector.extract_strided_slice %137 {offsets = [0, 32], sizes = [8, 32], strides = [1, 1]} : vector<8x128xf32> to vector<8x32xf32>
    %141 = vector.extract_strided_slice %138 {offsets = [0, 64], sizes = [8, 32], strides = [1, 1]} : vector<8x128xf32> to vector<8x32xf32>
    %142 = vector.extract_strided_slice %137 {offsets = [0, 96], sizes = [8, 32], strides = [1, 1]} : vector<8x128xf32> to vector<8x32xf32>
    %143 = arith.mulf %140, %106 : vector<8x32xf32>
    %144 = arith.mulf %139, %141 : vector<8x32xf32>
    %145 = arith.addf %143, %144 : vector<8x32xf32>
    %146 = math.tanh %145 : vector<8x32xf32>
    %147 = arith.mulf %142, %146 : vector<8x32xf32>
    %148 = vector.extract_strided_slice %129 {offsets = [0, 128], sizes = [8, 128], strides = [1, 1]} : vector<8x256xf32> to vector<8x128xf32>
    %149 = vector.extract_strided_slice %7 {offsets = [32, 128], sizes = [8, 128], strides = [1, 1]} : vector<64x256xf32> to vector<8x128xf32>
    %150 = arith.addf %148, %149 : vector<8x128xf32>
    %151 = arith.negf %150 : vector<8x128xf32>
    %152 = math.exp %151 : vector<8x128xf32>
    %cst_21 = arith.constant 1.000000e+00 : f32
    %153 = vector.broadcast %cst_21 : f32 to vector<8x128xf32>
    %154 = arith.addf %153, %152 : vector<8x128xf32>
    %155 = arith.divf %153, %154 : vector<8x128xf32>
    %156 = math.tanh %150 : vector<8x128xf32>
    %157 = vector.extract_strided_slice %155 {offsets = [0, 0], sizes = [8, 32], strides = [1, 1]} : vector<8x128xf32> to vector<8x32xf32>
    %158 = vector.extract_strided_slice %155 {offsets = [0, 32], sizes = [8, 32], strides = [1, 1]} : vector<8x128xf32> to vector<8x32xf32>
    %159 = vector.extract_strided_slice %156 {offsets = [0, 64], sizes = [8, 32], strides = [1, 1]} : vector<8x128xf32> to vector<8x32xf32>
    %160 = vector.extract_strided_slice %155 {offsets = [0, 96], sizes = [8, 32], strides = [1, 1]} : vector<8x128xf32> to vector<8x32xf32>
    %161 = arith.mulf %158, %124 : vector<8x32xf32>
    %162 = arith.mulf %157, %159 : vector<8x32xf32>
    %163 = arith.addf %161, %162 : vector<8x32xf32>
    %164 = math.tanh %163 : vector<8x32xf32>
    %165 = arith.mulf %160, %164 : vector<8x32xf32>
    %166 = tpu.concatenate %147, %165 in 1 : vector<8x32xf32>, vector<8x32xf32> -> vector<8x64xf32>
    %167 = arith.truncf %166 : vector<8x64xf32> to vector<8x64xbf16>
    %cst_22 = arith.constant dense<0.000000e+00> : vector<8x256xf32>
    %168 = tpu.matmul %167, %2, %cst_22 {dimension_numbers = #tpu.dot_dimension_numbers<[1], [0], [0], [1], [0, 0, 1, 1], [], []>} : vector<8x64xbf16>, vector<64x256xbf16>, vector<8x256xf32> -> vector<8x256xf32>
    %169 = vector.extract_strided_slice %168 {offsets = [0, 0], sizes = [8, 128], strides = [1, 1]} : vector<8x256xf32> to vector<8x128xf32>
    %170 = vector.extract_strided_slice %7 {offsets = [32, 0], sizes = [8, 128], strides = [1, 1]} : vector<64x256xf32> to vector<8x128xf32>
    %171 = arith.addf %169, %170 : vector<8x128xf32>
    %172 = arith.negf %171 : vector<8x128xf32>
    %173 = math.exp %172 : vector<8x128xf32>
    %cst_23 = arith.constant 1.000000e+00 : f32
    %174 = vector.broadcast %cst_23 : f32 to vector<8x128xf32>
    %175 = arith.addf %174, %173 : vector<8x128xf32>
    %176 = arith.divf %174, %175 : vector<8x128xf32>
    %177 = math.tanh %171 : vector<8x128xf32>
    %178 = vector.extract_strided_slice %176 {offsets = [0, 0], sizes = [8, 32], strides = [1, 1]} : vector<8x128xf32> to vector<8x32xf32>
    %179 = vector.extract_strided_slice %176 {offsets = [0, 32], sizes = [8, 32], strides = [1, 1]} : vector<8x128xf32> to vector<8x32xf32>
    %180 = vector.extract_strided_slice %177 {offsets = [0, 64], sizes = [8, 32], strides = [1, 1]} : vector<8x128xf32> to vector<8x32xf32>
    %181 = vector.extract_strided_slice %176 {offsets = [0, 96], sizes = [8, 32], strides = [1, 1]} : vector<8x128xf32> to vector<8x32xf32>
    %182 = arith.mulf %179, %145 : vector<8x32xf32>
    %183 = arith.mulf %178, %180 : vector<8x32xf32>
    %184 = arith.addf %182, %183 : vector<8x32xf32>
    %185 = math.tanh %184 : vector<8x32xf32>
    %186 = arith.mulf %181, %185 : vector<8x32xf32>
    %187 = vector.extract_strided_slice %168 {offsets = [0, 128], sizes = [8, 128], strides = [1, 1]} : vector<8x256xf32> to vector<8x128xf32>
    %188 = vector.extract_strided_slice %7 {offsets = [24, 128], sizes = [8, 128], strides = [1, 1]} : vector<64x256xf32> to vector<8x128xf32>
    %189 = arith.addf %187, %188 : vector<8x128xf32>
    %190 = arith.negf %189 : vector<8x128xf32>
    %191 = math.exp %190 : vector<8x128xf32>
    %cst_24 = arith.constant 1.000000e+00 : f32
    %192 = vector.broadcast %cst_24 : f32 to vector<8x128xf32>
    %193 = arith.addf %192, %191 : vector<8x128xf32>
    %194 = arith.divf %192, %193 : vector<8x128xf32>
    %195 = math.tanh %189 : vector<8x128xf32>
    %196 = vector.extract_strided_slice %194 {offsets = [0, 0], sizes = [8, 32], strides = [1, 1]} : vector<8x128xf32> to vector<8x32xf32>
    %197 = vector.extract_strided_slice %194 {offsets = [0, 32], sizes = [8, 32], strides = [1, 1]} : vector<8x128xf32> to vector<8x32xf32>
    %198 = vector.extract_strided_slice %195 {offsets = [0, 64], sizes = [8, 32], strides = [1, 1]} : vector<8x128xf32> to vector<8x32xf32>
    %199 = vector.extract_strided_slice %194 {offsets = [0, 96], sizes = [8, 32], strides = [1, 1]} : vector<8x128xf32> to vector<8x32xf32>
    %200 = arith.mulf %197, %163 : vector<8x32xf32>
    %201 = arith.mulf %196, %198 : vector<8x32xf32>
    %202 = arith.addf %200, %201 : vector<8x32xf32>
    %203 = math.tanh %202 : vector<8x32xf32>
    %204 = arith.mulf %199, %203 : vector<8x32xf32>
    %205 = tpu.concatenate %186, %204 in 1 : vector<8x32xf32>, vector<8x32xf32> -> vector<8x64xf32>
    %206 = arith.truncf %205 : vector<8x64xf32> to vector<8x64xbf16>
    %cst_25 = arith.constant dense<0.000000e+00> : vector<8x256xf32>
    %207 = tpu.matmul %206, %2, %cst_25 {dimension_numbers = #tpu.dot_dimension_numbers<[1], [0], [0], [1], [0, 0, 1, 1], [], []>} : vector<8x64xbf16>, vector<64x256xbf16>, vector<8x256xf32> -> vector<8x256xf32>
    %208 = vector.extract_strided_slice %207 {offsets = [0, 0], sizes = [8, 128], strides = [1, 1]} : vector<8x256xf32> to vector<8x128xf32>
    %209 = vector.extract_strided_slice %7 {offsets = [40, 0], sizes = [8, 128], strides = [1, 1]} : vector<64x256xf32> to vector<8x128xf32>
    %210 = arith.addf %208, %209 : vector<8x128xf32>
    %211 = arith.negf %210 : vector<8x128xf32>
    %212 = math.exp %211 : vector<8x128xf32>
    %cst_26 = arith.constant 1.000000e+00 : f32
    %213 = vector.broadcast %cst_26 : f32 to vector<8x128xf32>
    %214 = arith.addf %213, %212 : vector<8x128xf32>
    %215 = arith.divf %213, %214 : vector<8x128xf32>
    %216 = math.tanh %210 : vector<8x128xf32>
    %217 = vector.extract_strided_slice %215 {offsets = [0, 0], sizes = [8, 32], strides = [1, 1]} : vector<8x128xf32> to vector<8x32xf32>
    %218 = vector.extract_strided_slice %215 {offsets = [0, 32], sizes = [8, 32], strides = [1, 1]} : vector<8x128xf32> to vector<8x32xf32>
    %219 = vector.extract_strided_slice %216 {offsets = [0, 64], sizes = [8, 32], strides = [1, 1]} : vector<8x128xf32> to vector<8x32xf32>
    %220 = vector.extract_strided_slice %215 {offsets = [0, 96], sizes = [8, 32], strides = [1, 1]} : vector<8x128xf32> to vector<8x32xf32>
    %221 = arith.mulf %218, %184 : vector<8x32xf32>
    %222 = arith.mulf %217, %219 : vector<8x32xf32>
    %223 = arith.addf %221, %222 : vector<8x32xf32>
    %224 = math.tanh %223 : vector<8x32xf32>
    %225 = arith.mulf %220, %224 : vector<8x32xf32>
    %226 = vector.extract_strided_slice %207 {offsets = [0, 128], sizes = [8, 128], strides = [1, 1]} : vector<8x256xf32> to vector<8x128xf32>
    %227 = vector.extract_strided_slice %7 {offsets = [16, 128], sizes = [8, 128], strides = [1, 1]} : vector<64x256xf32> to vector<8x128xf32>
    %228 = arith.addf %226, %227 : vector<8x128xf32>
    %229 = arith.negf %228 : vector<8x128xf32>
    %230 = math.exp %229 : vector<8x128xf32>
    %cst_27 = arith.constant 1.000000e+00 : f32
    %231 = vector.broadcast %cst_27 : f32 to vector<8x128xf32>
    %232 = arith.addf %231, %230 : vector<8x128xf32>
    %233 = arith.divf %231, %232 : vector<8x128xf32>
    %234 = math.tanh %228 : vector<8x128xf32>
    %235 = vector.extract_strided_slice %233 {offsets = [0, 0], sizes = [8, 32], strides = [1, 1]} : vector<8x128xf32> to vector<8x32xf32>
    %236 = vector.extract_strided_slice %233 {offsets = [0, 32], sizes = [8, 32], strides = [1, 1]} : vector<8x128xf32> to vector<8x32xf32>
    %237 = vector.extract_strided_slice %234 {offsets = [0, 64], sizes = [8, 32], strides = [1, 1]} : vector<8x128xf32> to vector<8x32xf32>
    %238 = vector.extract_strided_slice %233 {offsets = [0, 96], sizes = [8, 32], strides = [1, 1]} : vector<8x128xf32> to vector<8x32xf32>
    %239 = arith.mulf %236, %202 : vector<8x32xf32>
    %240 = arith.mulf %235, %237 : vector<8x32xf32>
    %241 = arith.addf %239, %240 : vector<8x32xf32>
    %242 = math.tanh %241 : vector<8x32xf32>
    %243 = arith.mulf %238, %242 : vector<8x32xf32>
    %244 = tpu.concatenate %225, %243 in 1 : vector<8x32xf32>, vector<8x32xf32> -> vector<8x64xf32>
    %245 = arith.truncf %244 : vector<8x64xf32> to vector<8x64xbf16>
    %cst_28 = arith.constant dense<0.000000e+00> : vector<8x256xf32>
    %246 = tpu.matmul %245, %2, %cst_28 {dimension_numbers = #tpu.dot_dimension_numbers<[1], [0], [0], [1], [0, 0, 1, 1], [], []>} : vector<8x64xbf16>, vector<64x256xbf16>, vector<8x256xf32> -> vector<8x256xf32>
    %247 = vector.extract_strided_slice %246 {offsets = [0, 0], sizes = [8, 128], strides = [1, 1]} : vector<8x256xf32> to vector<8x128xf32>
    %248 = vector.extract_strided_slice %7 {offsets = [48, 0], sizes = [8, 128], strides = [1, 1]} : vector<64x256xf32> to vector<8x128xf32>
    %249 = arith.addf %247, %248 : vector<8x128xf32>
    %250 = arith.negf %249 : vector<8x128xf32>
    %251 = math.exp %250 : vector<8x128xf32>
    %cst_29 = arith.constant 1.000000e+00 : f32
    %252 = vector.broadcast %cst_29 : f32 to vector<8x128xf32>
    %253 = arith.addf %252, %251 : vector<8x128xf32>
    %254 = arith.divf %252, %253 : vector<8x128xf32>
    %255 = math.tanh %249 : vector<8x128xf32>
    %256 = vector.extract_strided_slice %254 {offsets = [0, 0], sizes = [8, 32], strides = [1, 1]} : vector<8x128xf32> to vector<8x32xf32>
    %257 = vector.extract_strided_slice %254 {offsets = [0, 32], sizes = [8, 32], strides = [1, 1]} : vector<8x128xf32> to vector<8x32xf32>
    %258 = vector.extract_strided_slice %255 {offsets = [0, 64], sizes = [8, 32], strides = [1, 1]} : vector<8x128xf32> to vector<8x32xf32>
    %259 = vector.extract_strided_slice %254 {offsets = [0, 96], sizes = [8, 32], strides = [1, 1]} : vector<8x128xf32> to vector<8x32xf32>
    %260 = arith.mulf %257, %223 : vector<8x32xf32>
    %261 = arith.mulf %256, %258 : vector<8x32xf32>
    %262 = arith.addf %260, %261 : vector<8x32xf32>
    %263 = math.tanh %262 : vector<8x32xf32>
    %264 = arith.mulf %259, %263 : vector<8x32xf32>
    %265 = vector.extract_strided_slice %246 {offsets = [0, 128], sizes = [8, 128], strides = [1, 1]} : vector<8x256xf32> to vector<8x128xf32>
    %266 = vector.extract_strided_slice %7 {offsets = [8, 128], sizes = [8, 128], strides = [1, 1]} : vector<64x256xf32> to vector<8x128xf32>
    %267 = arith.addf %265, %266 : vector<8x128xf32>
    %268 = arith.negf %267 : vector<8x128xf32>
    %269 = math.exp %268 : vector<8x128xf32>
    %cst_30 = arith.constant 1.000000e+00 : f32
    %270 = vector.broadcast %cst_30 : f32 to vector<8x128xf32>
    %271 = arith.addf %270, %269 : vector<8x128xf32>
    %272 = arith.divf %270, %271 : vector<8x128xf32>
    %273 = math.tanh %267 : vector<8x128xf32>
    %274 = vector.extract_strided_slice %272 {offsets = [0, 0], sizes = [8, 32], strides = [1, 1]} : vector<8x128xf32> to vector<8x32xf32>
    %275 = vector.extract_strided_slice %272 {offsets = [0, 32], sizes = [8, 32], strides = [1, 1]} : vector<8x128xf32> to vector<8x32xf32>
    %276 = vector.extract_strided_slice %273 {offsets = [0, 64], sizes = [8, 32], strides = [1, 1]} : vector<8x128xf32> to vector<8x32xf32>
    %277 = vector.extract_strided_slice %272 {offsets = [0, 96], sizes = [8, 32], strides = [1, 1]} : vector<8x128xf32> to vector<8x32xf32>
    %278 = arith.mulf %275, %241 : vector<8x32xf32>
    %279 = arith.mulf %274, %276 : vector<8x32xf32>
    %280 = arith.addf %278, %279 : vector<8x32xf32>
    %281 = math.tanh %280 : vector<8x32xf32>
    %282 = arith.mulf %277, %281 : vector<8x32xf32>
    %283 = tpu.concatenate %264, %282 in 1 : vector<8x32xf32>, vector<8x32xf32> -> vector<8x64xf32>
    %284 = arith.truncf %283 : vector<8x64xf32> to vector<8x64xbf16>
    %cst_31 = arith.constant dense<0.000000e+00> : vector<8x256xf32>
    %285 = tpu.matmul %284, %2, %cst_31 {dimension_numbers = #tpu.dot_dimension_numbers<[1], [0], [0], [1], [0, 0, 1, 1], [], []>} : vector<8x64xbf16>, vector<64x256xbf16>, vector<8x256xf32> -> vector<8x256xf32>
    %286 = vector.extract_strided_slice %285 {offsets = [0, 0], sizes = [8, 128], strides = [1, 1]} : vector<8x256xf32> to vector<8x128xf32>
    %287 = vector.extract_strided_slice %7 {offsets = [56, 0], sizes = [8, 128], strides = [1, 1]} : vector<64x256xf32> to vector<8x128xf32>
    %288 = arith.addf %286, %287 : vector<8x128xf32>
    %289 = arith.negf %288 : vector<8x128xf32>
    %290 = math.exp %289 : vector<8x128xf32>
    %cst_32 = arith.constant 1.000000e+00 : f32
    %291 = vector.broadcast %cst_32 : f32 to vector<8x128xf32>
    %292 = arith.addf %291, %290 : vector<8x128xf32>
    %293 = arith.divf %291, %292 : vector<8x128xf32>
    %294 = math.tanh %288 : vector<8x128xf32>
    %295 = vector.extract_strided_slice %293 {offsets = [0, 0], sizes = [8, 32], strides = [1, 1]} : vector<8x128xf32> to vector<8x32xf32>
    %296 = vector.extract_strided_slice %293 {offsets = [0, 32], sizes = [8, 32], strides = [1, 1]} : vector<8x128xf32> to vector<8x32xf32>
    %297 = vector.extract_strided_slice %294 {offsets = [0, 64], sizes = [8, 32], strides = [1, 1]} : vector<8x128xf32> to vector<8x32xf32>
    %298 = vector.extract_strided_slice %293 {offsets = [0, 96], sizes = [8, 32], strides = [1, 1]} : vector<8x128xf32> to vector<8x32xf32>
    %299 = arith.mulf %296, %262 : vector<8x32xf32>
    %300 = arith.mulf %295, %297 : vector<8x32xf32>
    %301 = arith.addf %299, %300 : vector<8x32xf32>
    %302 = math.tanh %301 : vector<8x32xf32>
    %303 = arith.mulf %298, %302 : vector<8x32xf32>
    %304 = vector.extract_strided_slice %285 {offsets = [0, 128], sizes = [8, 128], strides = [1, 1]} : vector<8x256xf32> to vector<8x128xf32>
    %305 = vector.extract_strided_slice %7 {offsets = [0, 128], sizes = [8, 128], strides = [1, 1]} : vector<64x256xf32> to vector<8x128xf32>
    %306 = arith.addf %304, %305 : vector<8x128xf32>
    %307 = arith.negf %306 : vector<8x128xf32>
    %308 = math.exp %307 : vector<8x128xf32>
    %cst_33 = arith.constant 1.000000e+00 : f32
    %309 = vector.broadcast %cst_33 : f32 to vector<8x128xf32>
    %310 = arith.addf %309, %308 : vector<8x128xf32>
    %311 = arith.divf %309, %310 : vector<8x128xf32>
    %312 = math.tanh %306 : vector<8x128xf32>
    %313 = vector.extract_strided_slice %311 {offsets = [0, 0], sizes = [8, 32], strides = [1, 1]} : vector<8x128xf32> to vector<8x32xf32>
    %314 = vector.extract_strided_slice %311 {offsets = [0, 32], sizes = [8, 32], strides = [1, 1]} : vector<8x128xf32> to vector<8x32xf32>
    %315 = vector.extract_strided_slice %312 {offsets = [0, 64], sizes = [8, 32], strides = [1, 1]} : vector<8x128xf32> to vector<8x32xf32>
    %316 = vector.extract_strided_slice %311 {offsets = [0, 96], sizes = [8, 32], strides = [1, 1]} : vector<8x128xf32> to vector<8x32xf32>
    %317 = arith.mulf %314, %280 : vector<8x32xf32>
    %318 = arith.mulf %313, %315 : vector<8x32xf32>
    %319 = arith.addf %317, %318 : vector<8x32xf32>
    %320 = math.tanh %319 : vector<8x32xf32>
    %321 = arith.mulf %316, %320 : vector<8x32xf32>
    %322 = tpu.concatenate %30, %321 in 1 : vector<8x32xf32>, vector<8x32xf32> -> vector<8x64xf32>
    %323 = tpu.concatenate %69, %282 in 1 : vector<8x32xf32>, vector<8x32xf32> -> vector<8x64xf32>
    %324 = tpu.concatenate %108, %243 in 1 : vector<8x32xf32>, vector<8x32xf32> -> vector<8x64xf32>
    %325 = tpu.concatenate %147, %204 in 1 : vector<8x32xf32>, vector<8x32xf32> -> vector<8x64xf32>
    %326 = tpu.concatenate %186, %165 in 1 : vector<8x32xf32>, vector<8x32xf32> -> vector<8x64xf32>
    %327 = tpu.concatenate %225, %126 in 1 : vector<8x32xf32>, vector<8x32xf32> -> vector<8x64xf32>
    %328 = tpu.concatenate %264, %87 in 1 : vector<8x32xf32>, vector<8x32xf32> -> vector<8x64xf32>
    %329 = tpu.concatenate %303, %48 in 1 : vector<8x32xf32>, vector<8x32xf32> -> vector<8x64xf32>
    %330 = tpu.concatenate %322, %323, %324, %325, %326, %327, %328, %329 in 0 : vector<8x64xf32>, vector<8x64xf32>, vector<8x64xf32>, vector<8x64xf32>, vector<8x64xf32>, vector<8x64xf32>, vector<8x64xf32>, vector<8x64xf32> -> vector<64x64xf32>
    %c64 = arith.constant 64 : index
    %c0_34 = arith.constant 0 : index
    %331 = vector.load %arg1[%c64, %c0_34] : memref<128x256xbf16, #tpu.memory_space<vmem>>, vector<64x256xbf16>
    %c64_35 = arith.constant 64 : index
    %c0_36 = arith.constant 0 : index
    %332 = vector.load %arg2[%c64_35, %c0_36] : memref<128x256xbf16, #tpu.memory_space<vmem>>, vector<64x256xbf16>
    %c1 = arith.constant 1 : index
    %c0_37 = arith.constant 0 : index
    %333 = vector.load %arg3[%c1, %c0_37] : memref<2x256xf32, #tpu.memory_space<vmem>>, vector<1x256xf32>
    %334 = arith.truncf %330 : vector<64x64xf32> to vector<64x64xbf16>
    %cst_38 = arith.constant dense<0.000000e+00> : vector<64x256xf32>
    %335 = tpu.matmul %334, %331, %cst_38 {dimension_numbers = #tpu.dot_dimension_numbers<[1], [0], [0], [1], [0, 0, 1, 1], [], []>} : vector<64x64xbf16>, vector<64x256xbf16>, vector<64x256xf32> -> vector<64x256xf32>
    %336 = vector.broadcast %333 : vector<1x256xf32> to vector<64x256xf32>
    %337 = arith.addf %335, %336 : vector<64x256xf32>
    %cst_39 = arith.constant 0.000000e+00 : f32
    %338 = vector.broadcast %cst_39 : f32 to vector<8x64xf32>
    %cst_40 = arith.constant 0.000000e+00 : f32
    %339 = vector.broadcast %cst_40 : f32 to vector<8x32xf32>
    %cst_41 = arith.constant 0.000000e+00 : f32
    %340 = vector.broadcast %cst_41 : f32 to vector<8x32xf32>
    %341 = arith.truncf %338 : vector<8x64xf32> to vector<8x64xbf16>
    %cst_42 = arith.constant dense<0.000000e+00> : vector<8x256xf32>
    %342 = tpu.matmul %341, %332, %cst_42 {dimension_numbers = #tpu.dot_dimension_numbers<[1], [0], [0], [1], [0, 0, 1, 1], [], []>} : vector<8x64xbf16>, vector<64x256xbf16>, vector<8x256xf32> -> vector<8x256xf32>
    %343 = vector.extract_strided_slice %342 {offsets = [0, 0], sizes = [8, 128], strides = [1, 1]} : vector<8x256xf32> to vector<8x128xf32>
    %344 = vector.extract_strided_slice %337 {offsets = [0, 0], sizes = [8, 128], strides = [1, 1]} : vector<64x256xf32> to vector<8x128xf32>
    %345 = arith.addf %343, %344 : vector<8x128xf32>
    %346 = arith.negf %345 : vector<8x128xf32>
    %347 = math.exp %346 : vector<8x128xf32>
    %cst_43 = arith.constant 1.000000e+00 : f32
    %348 = vector.broadcast %cst_43 : f32 to vector<8x128xf32>
    %349 = arith.addf %348, %347 : vector<8x128xf32>
    %350 = arith.divf %348, %349 : vector<8x128xf32>
    %351 = math.tanh %345 : vector<8x128xf32>
    %352 = vector.extract_strided_slice %350 {offsets = [0, 0], sizes = [8, 32], strides = [1, 1]} : vector<8x128xf32> to vector<8x32xf32>
    %353 = vector.extract_strided_slice %350 {offsets = [0, 32], sizes = [8, 32], strides = [1, 1]} : vector<8x128xf32> to vector<8x32xf32>
    %354 = vector.extract_strided_slice %351 {offsets = [0, 64], sizes = [8, 32], strides = [1, 1]} : vector<8x128xf32> to vector<8x32xf32>
    %355 = vector.extract_strided_slice %350 {offsets = [0, 96], sizes = [8, 32], strides = [1, 1]} : vector<8x128xf32> to vector<8x32xf32>
    %356 = arith.mulf %353, %339 : vector<8x32xf32>
    %357 = arith.mulf %352, %354 : vector<8x32xf32>
    %358 = arith.addf %356, %357 : vector<8x32xf32>
    %359 = math.tanh %358 : vector<8x32xf32>
    %360 = arith.mulf %355, %359 : vector<8x32xf32>
    %361 = vector.extract_strided_slice %342 {offsets = [0, 128], sizes = [8, 128], strides = [1, 1]} : vector<8x256xf32> to vector<8x128xf32>
    %362 = vector.extract_strided_slice %337 {offsets = [56, 128], sizes = [8, 128], strides = [1, 1]} : vector<64x256xf32> to vector<8x128xf32>
    %363 = arith.addf %361, %362 : vector<8x128xf32>
    %364 = arith.negf %363 : vector<8x128xf32>
    %365 = math.exp %364 : vector<8x128xf32>
    %cst_44 = arith.constant 1.000000e+00 : f32
    %366 = vector.broadcast %cst_44 : f32 to vector<8x128xf32>
    %367 = arith.addf %366, %365 : vector<8x128xf32>
    %368 = arith.divf %366, %367 : vector<8x128xf32>
    %369 = math.tanh %363 : vector<8x128xf32>
    %370 = vector.extract_strided_slice %368 {offsets = [0, 0], sizes = [8, 32], strides = [1, 1]} : vector<8x128xf32> to vector<8x32xf32>
    %371 = vector.extract_strided_slice %368 {offsets = [0, 32], sizes = [8, 32], strides = [1, 1]} : vector<8x128xf32> to vector<8x32xf32>
    %372 = vector.extract_strided_slice %369 {offsets = [0, 64], sizes = [8, 32], strides = [1, 1]} : vector<8x128xf32> to vector<8x32xf32>
    %373 = vector.extract_strided_slice %368 {offsets = [0, 96], sizes = [8, 32], strides = [1, 1]} : vector<8x128xf32> to vector<8x32xf32>
    %374 = arith.mulf %371, %340 : vector<8x32xf32>
    %375 = arith.mulf %370, %372 : vector<8x32xf32>
    %376 = arith.addf %374, %375 : vector<8x32xf32>
    %377 = math.tanh %376 : vector<8x32xf32>
    %378 = arith.mulf %373, %377 : vector<8x32xf32>
    %379 = tpu.concatenate %360, %378 in 1 : vector<8x32xf32>, vector<8x32xf32> -> vector<8x64xf32>
    %380 = arith.truncf %379 : vector<8x64xf32> to vector<8x64xbf16>
    %cst_45 = arith.constant dense<0.000000e+00> : vector<8x256xf32>
    %381 = tpu.matmul %380, %332, %cst_45 {dimension_numbers = #tpu.dot_dimension_numbers<[1], [0], [0], [1], [0, 0, 1, 1], [], []>} : vector<8x64xbf16>, vector<64x256xbf16>, vector<8x256xf32> -> vector<8x256xf32>
    %382 = vector.extract_strided_slice %381 {offsets = [0, 0], sizes = [8, 128], strides = [1, 1]} : vector<8x256xf32> to vector<8x128xf32>
    %383 = vector.extract_strided_slice %337 {offsets = [8, 0], sizes = [8, 128], strides = [1, 1]} : vector<64x256xf32> to vector<8x128xf32>
    %384 = arith.addf %382, %383 : vector<8x128xf32>
    %385 = arith.negf %384 : vector<8x128xf32>
    %386 = math.exp %385 : vector<8x128xf32>
    %cst_46 = arith.constant 1.000000e+00 : f32
    %387 = vector.broadcast %cst_46 : f32 to vector<8x128xf32>
    %388 = arith.addf %387, %386 : vector<8x128xf32>
    %389 = arith.divf %387, %388 : vector<8x128xf32>
    %390 = math.tanh %384 : vector<8x128xf32>
    %391 = vector.extract_strided_slice %389 {offsets = [0, 0], sizes = [8, 32], strides = [1, 1]} : vector<8x128xf32> to vector<8x32xf32>
    %392 = vector.extract_strided_slice %389 {offsets = [0, 32], sizes = [8, 32], strides = [1, 1]} : vector<8x128xf32> to vector<8x32xf32>
    %393 = vector.extract_strided_slice %390 {offsets = [0, 64], sizes = [8, 32], strides = [1, 1]} : vector<8x128xf32> to vector<8x32xf32>
    %394 = vector.extract_strided_slice %389 {offsets = [0, 96], sizes = [8, 32], strides = [1, 1]} : vector<8x128xf32> to vector<8x32xf32>
    %395 = arith.mulf %392, %358 : vector<8x32xf32>
    %396 = arith.mulf %391, %393 : vector<8x32xf32>
    %397 = arith.addf %395, %396 : vector<8x32xf32>
    %398 = math.tanh %397 : vector<8x32xf32>
    %399 = arith.mulf %394, %398 : vector<8x32xf32>
    %400 = vector.extract_strided_slice %381 {offsets = [0, 128], sizes = [8, 128], strides = [1, 1]} : vector<8x256xf32> to vector<8x128xf32>
    %401 = vector.extract_strided_slice %337 {offsets = [48, 128], sizes = [8, 128], strides = [1, 1]} : vector<64x256xf32> to vector<8x128xf32>
    %402 = arith.addf %400, %401 : vector<8x128xf32>
    %403 = arith.negf %402 : vector<8x128xf32>
    %404 = math.exp %403 : vector<8x128xf32>
    %cst_47 = arith.constant 1.000000e+00 : f32
    %405 = vector.broadcast %cst_47 : f32 to vector<8x128xf32>
    %406 = arith.addf %405, %404 : vector<8x128xf32>
    %407 = arith.divf %405, %406 : vector<8x128xf32>
    %408 = math.tanh %402 : vector<8x128xf32>
    %409 = vector.extract_strided_slice %407 {offsets = [0, 0], sizes = [8, 32], strides = [1, 1]} : vector<8x128xf32> to vector<8x32xf32>
    %410 = vector.extract_strided_slice %407 {offsets = [0, 32], sizes = [8, 32], strides = [1, 1]} : vector<8x128xf32> to vector<8x32xf32>
    %411 = vector.extract_strided_slice %408 {offsets = [0, 64], sizes = [8, 32], strides = [1, 1]} : vector<8x128xf32> to vector<8x32xf32>
    %412 = vector.extract_strided_slice %407 {offsets = [0, 96], sizes = [8, 32], strides = [1, 1]} : vector<8x128xf32> to vector<8x32xf32>
    %413 = arith.mulf %410, %376 : vector<8x32xf32>
    %414 = arith.mulf %409, %411 : vector<8x32xf32>
    %415 = arith.addf %413, %414 : vector<8x32xf32>
    %416 = math.tanh %415 : vector<8x32xf32>
    %417 = arith.mulf %412, %416 : vector<8x32xf32>
    %418 = tpu.concatenate %399, %417 in 1 : vector<8x32xf32>, vector<8x32xf32> -> vector<8x64xf32>
    %419 = arith.truncf %418 : vector<8x64xf32> to vector<8x64xbf16>
    %cst_48 = arith.constant dense<0.000000e+00> : vector<8x256xf32>
    %420 = tpu.matmul %419, %332, %cst_48 {dimension_numbers = #tpu.dot_dimension_numbers<[1], [0], [0], [1], [0, 0, 1, 1], [], []>} : vector<8x64xbf16>, vector<64x256xbf16>, vector<8x256xf32> -> vector<8x256xf32>
    %421 = vector.extract_strided_slice %420 {offsets = [0, 0], sizes = [8, 128], strides = [1, 1]} : vector<8x256xf32> to vector<8x128xf32>
    %422 = vector.extract_strided_slice %337 {offsets = [16, 0], sizes = [8, 128], strides = [1, 1]} : vector<64x256xf32> to vector<8x128xf32>
    %423 = arith.addf %421, %422 : vector<8x128xf32>
    %424 = arith.negf %423 : vector<8x128xf32>
    %425 = math.exp %424 : vector<8x128xf32>
    %cst_49 = arith.constant 1.000000e+00 : f32
    %426 = vector.broadcast %cst_49 : f32 to vector<8x128xf32>
    %427 = arith.addf %426, %425 : vector<8x128xf32>
    %428 = arith.divf %426, %427 : vector<8x128xf32>
    %429 = math.tanh %423 : vector<8x128xf32>
    %430 = vector.extract_strided_slice %428 {offsets = [0, 0], sizes = [8, 32], strides = [1, 1]} : vector<8x128xf32> to vector<8x32xf32>
    %431 = vector.extract_strided_slice %428 {offsets = [0, 32], sizes = [8, 32], strides = [1, 1]} : vector<8x128xf32> to vector<8x32xf32>
    %432 = vector.extract_strided_slice %429 {offsets = [0, 64], sizes = [8, 32], strides = [1, 1]} : vector<8x128xf32> to vector<8x32xf32>
    %433 = vector.extract_strided_slice %428 {offsets = [0, 96], sizes = [8, 32], strides = [1, 1]} : vector<8x128xf32> to vector<8x32xf32>
    %434 = arith.mulf %431, %397 : vector<8x32xf32>
    %435 = arith.mulf %430, %432 : vector<8x32xf32>
    %436 = arith.addf %434, %435 : vector<8x32xf32>
    %437 = math.tanh %436 : vector<8x32xf32>
    %438 = arith.mulf %433, %437 : vector<8x32xf32>
    %439 = vector.extract_strided_slice %420 {offsets = [0, 128], sizes = [8, 128], strides = [1, 1]} : vector<8x256xf32> to vector<8x128xf32>
    %440 = vector.extract_strided_slice %337 {offsets = [40, 128], sizes = [8, 128], strides = [1, 1]} : vector<64x256xf32> to vector<8x128xf32>
    %441 = arith.addf %439, %440 : vector<8x128xf32>
    %442 = arith.negf %441 : vector<8x128xf32>
    %443 = math.exp %442 : vector<8x128xf32>
    %cst_50 = arith.constant 1.000000e+00 : f32
    %444 = vector.broadcast %cst_50 : f32 to vector<8x128xf32>
    %445 = arith.addf %444, %443 : vector<8x128xf32>
    %446 = arith.divf %444, %445 : vector<8x128xf32>
    %447 = math.tanh %441 : vector<8x128xf32>
    %448 = vector.extract_strided_slice %446 {offsets = [0, 0], sizes = [8, 32], strides = [1, 1]} : vector<8x128xf32> to vector<8x32xf32>
    %449 = vector.extract_strided_slice %446 {offsets = [0, 32], sizes = [8, 32], strides = [1, 1]} : vector<8x128xf32> to vector<8x32xf32>
    %450 = vector.extract_strided_slice %447 {offsets = [0, 64], sizes = [8, 32], strides = [1, 1]} : vector<8x128xf32> to vector<8x32xf32>
    %451 = vector.extract_strided_slice %446 {offsets = [0, 96], sizes = [8, 32], strides = [1, 1]} : vector<8x128xf32> to vector<8x32xf32>
    %452 = arith.mulf %449, %415 : vector<8x32xf32>
    %453 = arith.mulf %448, %450 : vector<8x32xf32>
    %454 = arith.addf %452, %453 : vector<8x32xf32>
    %455 = math.tanh %454 : vector<8x32xf32>
    %456 = arith.mulf %451, %455 : vector<8x32xf32>
    %457 = tpu.concatenate %438, %456 in 1 : vector<8x32xf32>, vector<8x32xf32> -> vector<8x64xf32>
    %458 = arith.truncf %457 : vector<8x64xf32> to vector<8x64xbf16>
    %cst_51 = arith.constant dense<0.000000e+00> : vector<8x256xf32>
    %459 = tpu.matmul %458, %332, %cst_51 {dimension_numbers = #tpu.dot_dimension_numbers<[1], [0], [0], [1], [0, 0, 1, 1], [], []>} : vector<8x64xbf16>, vector<64x256xbf16>, vector<8x256xf32> -> vector<8x256xf32>
    %460 = vector.extract_strided_slice %459 {offsets = [0, 0], sizes = [8, 128], strides = [1, 1]} : vector<8x256xf32> to vector<8x128xf32>
    %461 = vector.extract_strided_slice %337 {offsets = [24, 0], sizes = [8, 128], strides = [1, 1]} : vector<64x256xf32> to vector<8x128xf32>
    %462 = arith.addf %460, %461 : vector<8x128xf32>
    %463 = arith.negf %462 : vector<8x128xf32>
    %464 = math.exp %463 : vector<8x128xf32>
    %cst_52 = arith.constant 1.000000e+00 : f32
    %465 = vector.broadcast %cst_52 : f32 to vector<8x128xf32>
    %466 = arith.addf %465, %464 : vector<8x128xf32>
    %467 = arith.divf %465, %466 : vector<8x128xf32>
    %468 = math.tanh %462 : vector<8x128xf32>
    %469 = vector.extract_strided_slice %467 {offsets = [0, 0], sizes = [8, 32], strides = [1, 1]} : vector<8x128xf32> to vector<8x32xf32>
    %470 = vector.extract_strided_slice %467 {offsets = [0, 32], sizes = [8, 32], strides = [1, 1]} : vector<8x128xf32> to vector<8x32xf32>
    %471 = vector.extract_strided_slice %468 {offsets = [0, 64], sizes = [8, 32], strides = [1, 1]} : vector<8x128xf32> to vector<8x32xf32>
    %472 = vector.extract_strided_slice %467 {offsets = [0, 96], sizes = [8, 32], strides = [1, 1]} : vector<8x128xf32> to vector<8x32xf32>
    %473 = arith.mulf %470, %436 : vector<8x32xf32>
    %474 = arith.mulf %469, %471 : vector<8x32xf32>
    %475 = arith.addf %473, %474 : vector<8x32xf32>
    %476 = math.tanh %475 : vector<8x32xf32>
    %477 = arith.mulf %472, %476 : vector<8x32xf32>
    %478 = vector.extract_strided_slice %459 {offsets = [0, 128], sizes = [8, 128], strides = [1, 1]} : vector<8x256xf32> to vector<8x128xf32>
    %479 = vector.extract_strided_slice %337 {offsets = [32, 128], sizes = [8, 128], strides = [1, 1]} : vector<64x256xf32> to vector<8x128xf32>
    %480 = arith.addf %478, %479 : vector<8x128xf32>
    %481 = arith.negf %480 : vector<8x128xf32>
    %482 = math.exp %481 : vector<8x128xf32>
    %cst_53 = arith.constant 1.000000e+00 : f32
    %483 = vector.broadcast %cst_53 : f32 to vector<8x128xf32>
    %484 = arith.addf %483, %482 : vector<8x128xf32>
    %485 = arith.divf %483, %484 : vector<8x128xf32>
    %486 = math.tanh %480 : vector<8x128xf32>
    %487 = vector.extract_strided_slice %485 {offsets = [0, 0], sizes = [8, 32], strides = [1, 1]} : vector<8x128xf32> to vector<8x32xf32>
    %488 = vector.extract_strided_slice %485 {offsets = [0, 32], sizes = [8, 32], strides = [1, 1]} : vector<8x128xf32> to vector<8x32xf32>
    %489 = vector.extract_strided_slice %486 {offsets = [0, 64], sizes = [8, 32], strides = [1, 1]} : vector<8x128xf32> to vector<8x32xf32>
    %490 = vector.extract_strided_slice %485 {offsets = [0, 96], sizes = [8, 32], strides = [1, 1]} : vector<8x128xf32> to vector<8x32xf32>
    %491 = arith.mulf %488, %454 : vector<8x32xf32>
    %492 = arith.mulf %487, %489 : vector<8x32xf32>
    %493 = arith.addf %491, %492 : vector<8x32xf32>
    %494 = math.tanh %493 : vector<8x32xf32>
    %495 = arith.mulf %490, %494 : vector<8x32xf32>
    %496 = tpu.concatenate %477, %495 in 1 : vector<8x32xf32>, vector<8x32xf32> -> vector<8x64xf32>
    %497 = arith.truncf %496 : vector<8x64xf32> to vector<8x64xbf16>
    %cst_54 = arith.constant dense<0.000000e+00> : vector<8x256xf32>
    %498 = tpu.matmul %497, %332, %cst_54 {dimension_numbers = #tpu.dot_dimension_numbers<[1], [0], [0], [1], [0, 0, 1, 1], [], []>} : vector<8x64xbf16>, vector<64x256xbf16>, vector<8x256xf32> -> vector<8x256xf32>
    %499 = vector.extract_strided_slice %498 {offsets = [0, 0], sizes = [8, 128], strides = [1, 1]} : vector<8x256xf32> to vector<8x128xf32>
    %500 = vector.extract_strided_slice %337 {offsets = [32, 0], sizes = [8, 128], strides = [1, 1]} : vector<64x256xf32> to vector<8x128xf32>
    %501 = arith.addf %499, %500 : vector<8x128xf32>
    %502 = arith.negf %501 : vector<8x128xf32>
    %503 = math.exp %502 : vector<8x128xf32>
    %cst_55 = arith.constant 1.000000e+00 : f32
    %504 = vector.broadcast %cst_55 : f32 to vector<8x128xf32>
    %505 = arith.addf %504, %503 : vector<8x128xf32>
    %506 = arith.divf %504, %505 : vector<8x128xf32>
    %507 = math.tanh %501 : vector<8x128xf32>
    %508 = vector.extract_strided_slice %506 {offsets = [0, 0], sizes = [8, 32], strides = [1, 1]} : vector<8x128xf32> to vector<8x32xf32>
    %509 = vector.extract_strided_slice %506 {offsets = [0, 32], sizes = [8, 32], strides = [1, 1]} : vector<8x128xf32> to vector<8x32xf32>
    %510 = vector.extract_strided_slice %507 {offsets = [0, 64], sizes = [8, 32], strides = [1, 1]} : vector<8x128xf32> to vector<8x32xf32>
    %511 = vector.extract_strided_slice %506 {offsets = [0, 96], sizes = [8, 32], strides = [1, 1]} : vector<8x128xf32> to vector<8x32xf32>
    %512 = arith.mulf %509, %475 : vector<8x32xf32>
    %513 = arith.mulf %508, %510 : vector<8x32xf32>
    %514 = arith.addf %512, %513 : vector<8x32xf32>
    %515 = math.tanh %514 : vector<8x32xf32>
    %516 = arith.mulf %511, %515 : vector<8x32xf32>
    %517 = vector.extract_strided_slice %498 {offsets = [0, 128], sizes = [8, 128], strides = [1, 1]} : vector<8x256xf32> to vector<8x128xf32>
    %518 = vector.extract_strided_slice %337 {offsets = [24, 128], sizes = [8, 128], strides = [1, 1]} : vector<64x256xf32> to vector<8x128xf32>
    %519 = arith.addf %517, %518 : vector<8x128xf32>
    %520 = arith.negf %519 : vector<8x128xf32>
    %521 = math.exp %520 : vector<8x128xf32>
    %cst_56 = arith.constant 1.000000e+00 : f32
    %522 = vector.broadcast %cst_56 : f32 to vector<8x128xf32>
    %523 = arith.addf %522, %521 : vector<8x128xf32>
    %524 = arith.divf %522, %523 : vector<8x128xf32>
    %525 = math.tanh %519 : vector<8x128xf32>
    %526 = vector.extract_strided_slice %524 {offsets = [0, 0], sizes = [8, 32], strides = [1, 1]} : vector<8x128xf32> to vector<8x32xf32>
    %527 = vector.extract_strided_slice %524 {offsets = [0, 32], sizes = [8, 32], strides = [1, 1]} : vector<8x128xf32> to vector<8x32xf32>
    %528 = vector.extract_strided_slice %525 {offsets = [0, 64], sizes = [8, 32], strides = [1, 1]} : vector<8x128xf32> to vector<8x32xf32>
    %529 = vector.extract_strided_slice %524 {offsets = [0, 96], sizes = [8, 32], strides = [1, 1]} : vector<8x128xf32> to vector<8x32xf32>
    %530 = arith.mulf %527, %493 : vector<8x32xf32>
    %531 = arith.mulf %526, %528 : vector<8x32xf32>
    %532 = arith.addf %530, %531 : vector<8x32xf32>
    %533 = math.tanh %532 : vector<8x32xf32>
    %534 = arith.mulf %529, %533 : vector<8x32xf32>
    %535 = tpu.concatenate %516, %534 in 1 : vector<8x32xf32>, vector<8x32xf32> -> vector<8x64xf32>
    %536 = arith.truncf %535 : vector<8x64xf32> to vector<8x64xbf16>
    %cst_57 = arith.constant dense<0.000000e+00> : vector<8x256xf32>
    %537 = tpu.matmul %536, %332, %cst_57 {dimension_numbers = #tpu.dot_dimension_numbers<[1], [0], [0], [1], [0, 0, 1, 1], [], []>} : vector<8x64xbf16>, vector<64x256xbf16>, vector<8x256xf32> -> vector<8x256xf32>
    %538 = vector.extract_strided_slice %537 {offsets = [0, 0], sizes = [8, 128], strides = [1, 1]} : vector<8x256xf32> to vector<8x128xf32>
    %539 = vector.extract_strided_slice %337 {offsets = [40, 0], sizes = [8, 128], strides = [1, 1]} : vector<64x256xf32> to vector<8x128xf32>
    %540 = arith.addf %538, %539 : vector<8x128xf32>
    %541 = arith.negf %540 : vector<8x128xf32>
    %542 = math.exp %541 : vector<8x128xf32>
    %cst_58 = arith.constant 1.000000e+00 : f32
    %543 = vector.broadcast %cst_58 : f32 to vector<8x128xf32>
    %544 = arith.addf %543, %542 : vector<8x128xf32>
    %545 = arith.divf %543, %544 : vector<8x128xf32>
    %546 = math.tanh %540 : vector<8x128xf32>
    %547 = vector.extract_strided_slice %545 {offsets = [0, 0], sizes = [8, 32], strides = [1, 1]} : vector<8x128xf32> to vector<8x32xf32>
    %548 = vector.extract_strided_slice %545 {offsets = [0, 32], sizes = [8, 32], strides = [1, 1]} : vector<8x128xf32> to vector<8x32xf32>
    %549 = vector.extract_strided_slice %546 {offsets = [0, 64], sizes = [8, 32], strides = [1, 1]} : vector<8x128xf32> to vector<8x32xf32>
    %550 = vector.extract_strided_slice %545 {offsets = [0, 96], sizes = [8, 32], strides = [1, 1]} : vector<8x128xf32> to vector<8x32xf32>
    %551 = arith.mulf %548, %514 : vector<8x32xf32>
    %552 = arith.mulf %547, %549 : vector<8x32xf32>
    %553 = arith.addf %551, %552 : vector<8x32xf32>
    %554 = math.tanh %553 : vector<8x32xf32>
    %555 = arith.mulf %550, %554 : vector<8x32xf32>
    %556 = vector.extract_strided_slice %537 {offsets = [0, 128], sizes = [8, 128], strides = [1, 1]} : vector<8x256xf32> to vector<8x128xf32>
    %557 = vector.extract_strided_slice %337 {offsets = [16, 128], sizes = [8, 128], strides = [1, 1]} : vector<64x256xf32> to vector<8x128xf32>
    %558 = arith.addf %556, %557 : vector<8x128xf32>
    %559 = arith.negf %558 : vector<8x128xf32>
    %560 = math.exp %559 : vector<8x128xf32>
    %cst_59 = arith.constant 1.000000e+00 : f32
    %561 = vector.broadcast %cst_59 : f32 to vector<8x128xf32>
    %562 = arith.addf %561, %560 : vector<8x128xf32>
    %563 = arith.divf %561, %562 : vector<8x128xf32>
    %564 = math.tanh %558 : vector<8x128xf32>
    %565 = vector.extract_strided_slice %563 {offsets = [0, 0], sizes = [8, 32], strides = [1, 1]} : vector<8x128xf32> to vector<8x32xf32>
    %566 = vector.extract_strided_slice %563 {offsets = [0, 32], sizes = [8, 32], strides = [1, 1]} : vector<8x128xf32> to vector<8x32xf32>
    %567 = vector.extract_strided_slice %564 {offsets = [0, 64], sizes = [8, 32], strides = [1, 1]} : vector<8x128xf32> to vector<8x32xf32>
    %568 = vector.extract_strided_slice %563 {offsets = [0, 96], sizes = [8, 32], strides = [1, 1]} : vector<8x128xf32> to vector<8x32xf32>
    %569 = arith.mulf %566, %532 : vector<8x32xf32>
    %570 = arith.mulf %565, %567 : vector<8x32xf32>
    %571 = arith.addf %569, %570 : vector<8x32xf32>
    %572 = math.tanh %571 : vector<8x32xf32>
    %573 = arith.mulf %568, %572 : vector<8x32xf32>
    %574 = tpu.concatenate %555, %573 in 1 : vector<8x32xf32>, vector<8x32xf32> -> vector<8x64xf32>
    %575 = arith.truncf %574 : vector<8x64xf32> to vector<8x64xbf16>
    %cst_60 = arith.constant dense<0.000000e+00> : vector<8x256xf32>
    %576 = tpu.matmul %575, %332, %cst_60 {dimension_numbers = #tpu.dot_dimension_numbers<[1], [0], [0], [1], [0, 0, 1, 1], [], []>} : vector<8x64xbf16>, vector<64x256xbf16>, vector<8x256xf32> -> vector<8x256xf32>
    %577 = vector.extract_strided_slice %576 {offsets = [0, 0], sizes = [8, 128], strides = [1, 1]} : vector<8x256xf32> to vector<8x128xf32>
    %578 = vector.extract_strided_slice %337 {offsets = [48, 0], sizes = [8, 128], strides = [1, 1]} : vector<64x256xf32> to vector<8x128xf32>
    %579 = arith.addf %577, %578 : vector<8x128xf32>
    %580 = arith.negf %579 : vector<8x128xf32>
    %581 = math.exp %580 : vector<8x128xf32>
    %cst_61 = arith.constant 1.000000e+00 : f32
    %582 = vector.broadcast %cst_61 : f32 to vector<8x128xf32>
    %583 = arith.addf %582, %581 : vector<8x128xf32>
    %584 = arith.divf %582, %583 : vector<8x128xf32>
    %585 = math.tanh %579 : vector<8x128xf32>
    %586 = vector.extract_strided_slice %584 {offsets = [0, 0], sizes = [8, 32], strides = [1, 1]} : vector<8x128xf32> to vector<8x32xf32>
    %587 = vector.extract_strided_slice %584 {offsets = [0, 32], sizes = [8, 32], strides = [1, 1]} : vector<8x128xf32> to vector<8x32xf32>
    %588 = vector.extract_strided_slice %585 {offsets = [0, 64], sizes = [8, 32], strides = [1, 1]} : vector<8x128xf32> to vector<8x32xf32>
    %589 = vector.extract_strided_slice %584 {offsets = [0, 96], sizes = [8, 32], strides = [1, 1]} : vector<8x128xf32> to vector<8x32xf32>
    %590 = arith.mulf %587, %553 : vector<8x32xf32>
    %591 = arith.mulf %586, %588 : vector<8x32xf32>
    %592 = arith.addf %590, %591 : vector<8x32xf32>
    %593 = math.tanh %592 : vector<8x32xf32>
    %594 = arith.mulf %589, %593 : vector<8x32xf32>
    %595 = vector.extract_strided_slice %576 {offsets = [0, 128], sizes = [8, 128], strides = [1, 1]} : vector<8x256xf32> to vector<8x128xf32>
    %596 = vector.extract_strided_slice %337 {offsets = [8, 128], sizes = [8, 128], strides = [1, 1]} : vector<64x256xf32> to vector<8x128xf32>
    %597 = arith.addf %595, %596 : vector<8x128xf32>
    %598 = arith.negf %597 : vector<8x128xf32>
    %599 = math.exp %598 : vector<8x128xf32>
    %cst_62 = arith.constant 1.000000e+00 : f32
    %600 = vector.broadcast %cst_62 : f32 to vector<8x128xf32>
    %601 = arith.addf %600, %599 : vector<8x128xf32>
    %602 = arith.divf %600, %601 : vector<8x128xf32>
    %603 = math.tanh %597 : vector<8x128xf32>
    %604 = vector.extract_strided_slice %602 {offsets = [0, 0], sizes = [8, 32], strides = [1, 1]} : vector<8x128xf32> to vector<8x32xf32>
    %605 = vector.extract_strided_slice %602 {offsets = [0, 32], sizes = [8, 32], strides = [1, 1]} : vector<8x128xf32> to vector<8x32xf32>
    %606 = vector.extract_strided_slice %603 {offsets = [0, 64], sizes = [8, 32], strides = [1, 1]} : vector<8x128xf32> to vector<8x32xf32>
    %607 = vector.extract_strided_slice %602 {offsets = [0, 96], sizes = [8, 32], strides = [1, 1]} : vector<8x128xf32> to vector<8x32xf32>
    %608 = arith.mulf %605, %571 : vector<8x32xf32>
    %609 = arith.mulf %604, %606 : vector<8x32xf32>
    %610 = arith.addf %608, %609 : vector<8x32xf32>
    %611 = math.tanh %610 : vector<8x32xf32>
    %612 = arith.mulf %607, %611 : vector<8x32xf32>
    %613 = tpu.concatenate %594, %612 in 1 : vector<8x32xf32>, vector<8x32xf32> -> vector<8x64xf32>
    %614 = arith.truncf %613 : vector<8x64xf32> to vector<8x64xbf16>
    %cst_63 = arith.constant dense<0.000000e+00> : vector<8x256xf32>
    %615 = tpu.matmul %614, %332, %cst_63 {dimension_numbers = #tpu.dot_dimension_numbers<[1], [0], [0], [1], [0, 0, 1, 1], [], []>} : vector<8x64xbf16>, vector<64x256xbf16>, vector<8x256xf32> -> vector<8x256xf32>
    %616 = vector.extract_strided_slice %615 {offsets = [0, 0], sizes = [8, 128], strides = [1, 1]} : vector<8x256xf32> to vector<8x128xf32>
    %617 = vector.extract_strided_slice %337 {offsets = [56, 0], sizes = [8, 128], strides = [1, 1]} : vector<64x256xf32> to vector<8x128xf32>
    %618 = arith.addf %616, %617 : vector<8x128xf32>
    %619 = arith.negf %618 : vector<8x128xf32>
    %620 = math.exp %619 : vector<8x128xf32>
    %cst_64 = arith.constant 1.000000e+00 : f32
    %621 = vector.broadcast %cst_64 : f32 to vector<8x128xf32>
    %622 = arith.addf %621, %620 : vector<8x128xf32>
    %623 = arith.divf %621, %622 : vector<8x128xf32>
    %624 = math.tanh %618 : vector<8x128xf32>
    %625 = vector.extract_strided_slice %623 {offsets = [0, 0], sizes = [8, 32], strides = [1, 1]} : vector<8x128xf32> to vector<8x32xf32>
    %626 = vector.extract_strided_slice %623 {offsets = [0, 32], sizes = [8, 32], strides = [1, 1]} : vector<8x128xf32> to vector<8x32xf32>
    %627 = vector.extract_strided_slice %624 {offsets = [0, 64], sizes = [8, 32], strides = [1, 1]} : vector<8x128xf32> to vector<8x32xf32>
    %628 = vector.extract_strided_slice %623 {offsets = [0, 96], sizes = [8, 32], strides = [1, 1]} : vector<8x128xf32> to vector<8x32xf32>
    %629 = arith.mulf %626, %592 : vector<8x32xf32>
    %630 = arith.mulf %625, %627 : vector<8x32xf32>
    %631 = arith.addf %629, %630 : vector<8x32xf32>
    %632 = math.tanh %631 : vector<8x32xf32>
    %633 = arith.mulf %628, %632 : vector<8x32xf32>
    %634 = tpu.concatenate %633, %378 in 1 : vector<8x32xf32>, vector<8x32xf32> -> vector<8x64xf32>
    %635 = arith.truncf %634 : vector<8x64xf32> to vector<8x64xbf16>
    %c0_65 = arith.constant 0 : index
    %c0_66 = arith.constant 0 : index
    %636 = vector.load %arg4[%c0_65, %c0_66] : memref<64x8xbf16, #tpu.memory_space<vmem>>, vector<64x8xbf16>
    %cst_67 = arith.constant dense<0.000000e+00> : vector<8x8xf32>
    %637 = tpu.matmul %635, %636, %cst_67 {dimension_numbers = #tpu.dot_dimension_numbers<[1], [0], [0], [1], [0, 0, 1, 1], [], []>} : vector<8x64xbf16>, vector<64x8xbf16>, vector<8x8xf32> -> vector<8x8xf32>
    %c0_68 = arith.constant 0 : index
    %c0_69 = arith.constant 0 : index
    %638 = vector.load %arg5[%c0_68, %c0_69] : memref<1x8xf32, #tpu.memory_space<vmem>>, vector<1x8xf32>
    %639 = vector.broadcast %638 : vector<1x8xf32> to vector<8x8xf32>
    %640 = arith.addf %637, %639 : vector<8x8xf32>
    %641 = math.tanh %640 : vector<8x8xf32>
    %c0_70 = arith.constant 0 : index
    %c0_71 = arith.constant 0 : index
    %642 = vector.load %arg6[%c0_70, %c0_71] : memref<8x8xf32, #tpu.memory_space<vmem>>, vector<8x8xf32>
    tpu.vector_store %arg6[%c0_70, %c0_71], %641 {strides = array<i32>} : memref<8x8xf32, #tpu.memory_space<vmem>>, vector<8x8xf32>,
    return
  }
}

</mosaic_0001>

<bundles_post_ra>
// kernel: tpu_custom_call.1
= control target key start
LH: loop header
LB: loop body
LE: loop exit
PB: predicated region body
PF: predicated region fallthrough
CT: control target
= control target key end

     0   :  { %11 = vsyncpa [#allocation3], 0  ;;  %s3304_s0 = inlined_call_operand.hbm [shape: f32[64,64], index: 0, kind: input, shape index: {}]   ;;  %s3305_s1 = inlined_call_operand.hbm [shape: bf16[128,256], index: 1, kind: input, shape index: {}]   ;;  %s3306_s2 = inlined_call_operand.hbm [shape: bf16[128,256], index: 2, kind: input, shape index: {}]   ;;  %s3307_s3 = inlined_call_operand.vmem [shape: f32[2,256], index: 3, kind: input, shape index: {}]   ;;  %s3308_s4 = inlined_call_operand.vmem [shape: bf16[64,8], index: 4, kind: input, shape index: {}]   ;;  %s3309_s5 = inlined_call_operand.vmem [shape: f32[1,8], index: 5, kind: input, shape index: {}]   ;;  %s3310_s6 = inlined_call_operand.hbm [shape: f32[8,8], index: 6, kind: output, shape index: {}]  }
   0x1   :  { %12 = vsyncpa [#allocation6], 0 }
   0x2   :  { %13 = vsyncpa [#allocation4], 0  ;;  %s2716_s21 = smov [#allocation5]   ;;  %s2717_s23 = smov [#allocation2]  }
   0x3   :  { %s31_s22 = sshll.u32 %s2716_s21, 4  ;;  %s19_s24 = sshll.u32 %s2717_s23, 4  ;;  %s32_s22 = int_to_ptr.vmem [resolvable:$true] %s31_s22  ;;  %s20_s24 = int_to_ptr.vmem [resolvable:$true] %s19_s24 }
   0x4   :  { %s2638_s25 = scalar_lea.vmem %s32_s22, 2048  ;;  %p2643_p1 = scmp.lt.s32.totalorder %s32_s22, %s32_s22 }
   0x5   :  { %p2639_p0 = scmp.ne.s32.totalorder %s32_s22, %s2638_s25  ;;  %p2644_p2 = scmp.lt.s32.totalorder %s2638_s25, %s2638_s25 }
   0x7   :  { %p2645_p3 = por %p2644_p2, %p2643_p1 }
   0x9   :  { %p2646_p4 = pnand %p2645_p3, %p2639_p0 }
   0xb   :  { %2649 = shalt.err (!%p2646_p4)
}
   0xc   :  { %s2718_s26 = smov 128   ;;  %s2719_s27 = smov 8  }
   0xd   :  { %37 = dma.hbm_to_vmem [thread:$0]  %s3305_s1, 2048, %s32_s22, [#allocation6], %s2718_s26, %s2718_s26, %s2719_s27  }
   0xe   :  { %s2658_s30 = scalar_lea.vmem %s20_s24, 1024  ;;  %p2663_p6 = scmp.lt.s32.totalorder %s20_s24, %s20_s24 }
   0xf   :  { %p2659_p5 = scmp.ne.s32.totalorder %s20_s24, %s2658_s30  ;;  %p2664_p7 = scmp.lt.s32.totalorder %s2658_s30, %s2658_s30 }
  0x11   :  { %p2665_p8 = por %p2664_p7, %p2663_p6 }
  0x13   :  { %p2666_p9 = pnand %p2665_p8, %p2659_p5 }
  0x15   :  { %2669 = shalt.err (!%p2666_p9)
}
  0x16   :  { %25 = dma.hbm_to_vmem [thread:$0]  %s3304_s0, 1024, %s20_s24, [#allocation3], %s2718_s26, %s2718_s26, %s2719_s27  }
  0x17   :  { %s2720_s9 = smov [#allocation7]  }
  0x18   :  { %s43_s10 = sshll.u32 %s2720_s9, 4  ;;  %s44_s10 = int_to_ptr.vmem [resolvable:$true] %s43_s10 }
  0x19   :  { %s2678_s11 = scalar_lea.vmem %s44_s10, 2048  ;;  %p2683_p11 = scmp.lt.s32.totalorder %s44_s10, %s44_s10 }
  0x1a   :  { %p2679_p10 = scmp.ne.s32.totalorder %s44_s10, %s2678_s11  ;;  %p2684_p12 = scmp.lt.s32.totalorder %s2678_s11, %s2678_s11 }
  0x1c   :  { %p2685_p13 = por %p2684_p12, %p2683_p11 }
  0x1e   :  { %p2686_p0 = pnand %p2685_p13, %p2679_p10 }
  0x20   :  { %2689 = shalt.err (!%p2686_p0)
}
  0x21   :  { %49 = dma.hbm_to_vmem [thread:$0]  %s3306_s2, 2048, %s44_s10, [#allocation6], %s2718_s26, %s2718_s26, %s2719_s27  }
  0x22   :  { %2710 = dma.done.wait [#allocation3], 1024  }
  0x23   :  { %2711 = vsyncadd [#allocation3], 4294966272 }
  0x24   :  { %2712 = dma.done.wait [#allocation6], 4096  }
  0x25   :  { %2713 = vsyncadd [#allocation6], 4294963200  ;;  %v2721_v0 = vmov 0   ;;  %v2328_v1 = vld [vmem:[#allocation5 + $0x34] ss:$8 sps:$4 sm:$0xff]   ;;  %v66_v16 = vld [vmem:[#allocation2] sm:$0xff]  ;;  %v96_v29 = vlaneseq }
  0x26   :  { %191 = vmatprep.mubr.bf16.mxu0 %v2721_v0  ;;  %307 = vmatprep.mubr.bf16.mxu1 %v2721_v0  ;;  %v2330_v2 = vld [vmem:[#allocation5 + $0x30] ss:$8 sps:$4 sm:$0xff]   ;;  %v2773_v3 = vld [vmem:[#allocation7 + $0x34] ss:$8 sps:$4 sm:$0xff]   ;;  %v2334_v5 = vld [vmem:[#allocation5 + $0x24] ss:$8 sps:$4 sm:$0xff]  }
  0x27   :  { %167 = vmatprep.subr.bf16.mxu0 %v2328_v1  ;;  %v2775_v4 = vld [vmem:[#allocation7 + $0x30] ss:$8 sps:$4 sm:$0xff]   ;;  %v2336_v6 = vld [vmem:[#allocation5 + $0x20] ss:$8 sps:$4 sm:$0xff]   ;;  %283 = vmatprep.subr.bf16.mxu1 %v2773_v3  ;;  %v2778_v7 = vld [vmem:[#allocation7 + $0x24] ss:$8 sps:$4 sm:$0xff]  }
  0x28   :  { %168 = vmatpush1.bf16.msra.mxu0 %v2330_v2  ;;  %284 = vmatpush1.bf16.msra.mxu1 %v2775_v4  ;;  %v2781_v8 = vld [vmem:[#allocation7 + $0x20] ss:$8 sps:$4 sm:$0xff]   ;;  %v2340_v9 = vld [vmem:[#allocation5 + $0x14] ss:$8 sps:$4 sm:$0xff]   ;;  %v2342_v10 = vld [vmem:[#allocation5 + $0x10] ss:$8 sps:$4 sm:$0xff]  }
  0x29   :  { %169 = vmatprep.subr.bf16.mxu0 %v2334_v5  ;;  %285 = vmatprep.subr.bf16.mxu1 %v2778_v7  ;;  %v2784_v11 = vld [vmem:[#allocation7 + $0x14] ss:$8 sps:$4 sm:$0xff]   ;;  %v2346_v12 = vld [vmem:[#allocation5 + $0x4] ss:$8 sps:$4 sm:$0xff]   ;;  %v2787_v13 = vld [vmem:[#allocation7 + $0x10] ss:$8 sps:$4 sm:$0xff]  }
  0x2a   :  { %v2790_v14 = vld [vmem:[#allocation7 + $0x4] ss:$8 sps:$4 sm:$0xff]   ;;  %v2348_v15 = vld [vmem:[#allocation5] ss:$8 sps:$4 sm:$0xff]   ;;  %vm146_vm0 = vcmask 523264   ;;  %v68_v20 = vld [vmem:[#allocation2 + $0x10] sm:$0xff] }
  0x2b   :  { %v67_v17 = vld [vmem:[#allocation2 + $0x8] sm:$0xff]  ;;  %v69_v21 = vld [vmem:[#allocation2 + $0x18] sm:$0xff]  ;;  %v70_v23 = vld [vmem:[#allocation2 + $0x20] sm:$0xff]  ;;  %v2825_v30 = vshrl.u32 %v96_v29, 7  ;;  %s2722_s13 = smov 64   ;;  %s2723_s14 = smov 32  }
  0x2c   :  { %170 = vmatpush1.bf16.msra.mxu0 %v2336_v6  ;;  %286 = vmatpush1.bf16.msra.mxu1 %v2781_v8  ;;  %v2793_v18 = vld [vmem:[#allocation7] ss:$8 sps:$4 sm:$0xff]   ;;  %v91_v19 = vpack.c.bf16 %v67_v17, %v66_v16  ;;  %v92_v22 = vpack.c.bf16 %v69_v21, %v68_v20  ;;  %v72_v26 = vld [vmem:[#allocation2 + $0x30] sm:$0xff]  ;;  %v73_v27 = vld [vmem:[#allocation2 + $0x38] sm:$0xff]  ;;  %vm374_vm1 = vcmask 261120   ;;  %vm2725_vm2 = vmmov 0  }
  0x2d   :  { %171 = vmatprep.subr.bf16.mxu0 %v2340_v9  ;;  %287 = vmatprep.subr.bf16.mxu1 %v2784_v11  ;;  %v71_v24 = vld [vmem:[#allocation2 + $0x28] sm:$0xff]  ;;  %v94_v28 = vpack.c.bf16 %v73_v27, %v72_v26  ;;  %v98_v31 = vsub.s32 0, %v2825_v30  ;;  %v90_v32 = vld [vmem:[%s3307_s3] ss:$2 sm:$0x3]  ;;  %v102_v33 = vsub.s32 1, %v2825_v30 }
  0x2e   :  { %v93_v25 = vpack.c.bf16 %v71_v24, %v70_v23  ;;  %vm2190_vm3 = vcmask 64512  }
  0x2f   :  { %v99_v34 = vrot.slane %v90_v32, %v98_v31  ;;  %v103_v35 = vrot.slane %v90_v32, %v102_v33 }
  0x30   :  { %172 = vmatpush1.bf16.msra.mxu0 %v2342_v10  ;;  %288 = vmatpush1.bf16.msra.mxu1 %v2787_v13 }
  0x31   :  { %173 = vmatprep.subr.bf16.mxu0 %v2346_v12  ;;  %289 = vmatprep.subr.bf16.mxu1 %v2790_v14 }
  0x34   :  { %174 = vmatpush1.bf16.msra.mxu0 %v2348_v15  ;;  %290 = vmatpush1.bf16.msra.mxu1 %v2793_v18 }
  0x35   :  { %492 = vmatprep.subr.bf16.mxu0 %v2773_v3  ;;  %388 = vmatprep.subr.bf16.mxu1 %v2773_v3 }
  0x37   :  { %2216 = vmatmul.mubr.msk.bf16.vlgmr.msra.gmra.mxu0 %vm146_vm0, %v91_v19  ;;  %308 = vmatmul.mubr.bf16.vlgmr.msra.gmra.mxu1 %v2721_v0 }
  0x38   :  { %201 = vmatprep.mubr.bf16.mxu0 %v2721_v0  ;;  %493 = vmatpush1.bf16.msra.mxu0 %v2775_v4 }
  0x39   :  { %494 = vmatprep.subr.bf16.mxu0 %v2778_v7  ;;  %389 = vmatpush1.bf16.msra.mxu1 %v2775_v4 }
  0x3a   :  { %412 = vmatprep.mubr.bf16.mxu1 %v2721_v0  ;;  %390 = vmatprep.subr.bf16.mxu1 %v2778_v7 }
  0x3c   :  { %495 = vmatpush1.bf16.msra.mxu0 %v2781_v8 }
  0x3d   :  { %496 = vmatprep.subr.bf16.mxu0 %v2784_v11  ;;  %391 = vmatpush1.bf16.msra.mxu1 %v2781_v8 }
  0x3e   :  { %392 = vmatprep.subr.bf16.mxu1 %v2784_v11 }
  0x3f   :  { %2217 = vmatmul.mubr.msk.bf16.gmra.mxu0 %vm146_vm0, %v92_v22 }
  0x40   :  { %211 = vmatprep.mubr.bf16.mxu0 %v2721_v0  ;;  %497 = vmatpush1.bf16.msra.mxu0 %v2787_v13 }
  0x41   :  { %498 = vmatprep.subr.bf16.mxu0 %v2790_v14  ;;  %393 = vmatpush1.bf16.msra.mxu1 %v2787_v13 }
  0x42   :  { %394 = vmatprep.subr.bf16.mxu1 %v2790_v14 }
  0x44   :  { %499 = vmatpush1.bf16.msra.mxu0 %v2793_v18 }
  0x45   :  { %700 = vmatprep.subr.bf16.mxu0 %v2773_v3  ;;  %395 = vmatpush1.bf16.msra.mxu1 %v2793_v18 }
  0x46   :  { %596 = vmatprep.subr.bf16.mxu1 %v2773_v3 }
  0x47   :  { %2218 = vmatmul.mubr.msk.bf16.gmra.mxu0 %vm146_vm0, %v93_v25 }
  0x48   :  { %221 = vmatprep.mubr.bf16.mxu0 %v2721_v0 }
  0x4f   :  { %2219 = vmatmul.mubr.msk.bf16.gmra.mxu0 %vm146_vm0, %v94_v28 }
  0x50   :  { %516 = vmatprep.mubr.bf16.mxu0 %v2721_v0 }
  0xf7   :  { %v193_v36 = vpop.f32.mrf.mxu0  ;;  %v309_v39 = vpop.f32.mrf.mxu1 }
  0xf8   :  { %v194_v37 = vadd.f32 %v193_v36, %v99_v34 }
  0xf9   :  { %v195_v38 = vpop.f32.mrf.mxu0  ;;  %v311_v43 = vpop.f32.mrf.mxu1 }
  0xfa   :  { %v2836_v40 = vadd.f32 %v195_v38, %v103_v35  ;;  %v316_v41 = vadd.f32 %v309_v39, %v194_v37 }
  0xfb   :  { %v197_v42 = vpop.f32.mrf.mxu0  ;;  %v313_v46 = vpop.f32.mrf.mxu1 }
  0xfc   :  { %2380 = vtanh.f32 %v316_v41  ;;  %v2838_v44 = vadd.f32 %v197_v42, %v99_v34  ;;  %v2228_v21 = vmul.f32 -1.442695, %v316_v41 }
  0xfd   :  { %v199_v45 = vpop.f32.mrf.mxu0  ;;  %v314_v49 = vpop.f32.mrf.mxu1 }
  0xfe   :  { %v2840_v47 = vadd.f32 %v199_v45, %v103_v35 }
  0xff   :  { %v203_v48 = vpop.f32.mrf.mxu0 }
 0x100   :  { %v2842_v50 = vadd.f32 %v203_v48, %v99_v34 }
 0x101   :  { %v205_v51 = vpop.f32.mrf.mxu0 }
 0x102   :  { %v2844_v52 = vadd.f32 %v205_v51, %v103_v35 }
 0x103   :  { %v207_v53 = vpop.f32.mrf.mxu0 }
 0x104   :  { %v2846_v54 = vadd.f32 %v207_v53, %v99_v34 }
 0x105   :  { %v209_v55 = vpop.f32.mrf.mxu0 }
 0x106   :  { %v2848_v56 = vadd.f32 %v209_v55, %v103_v35 }
 0x107   :  { %v213_v57 = vpop.f32.mrf.mxu0 }
 0x108   :  { %v2850_v58 = vadd.f32 %v213_v57, %v99_v34 }
 0x109   :  { %v2381_v59 = vpop.eup %2380  ;;  %v215_v60 = vpop.f32.mrf.mxu0 }
 0x10a   :  { %v2852_v61 = vadd.f32 %v215_v60, %v103_v35  ;;  %326 = vrot.lane.b32.xlu0 %v2381_v59, %s2722_s13 }
 0x10b   :  { %v217_v62 = vpop.f32.mrf.mxu0 }
 0x10c   :  { %v2855_v63 = vadd.f32 %v217_v62, %v99_v34 }
 0x10d   :  { %v219_v1 = vpop.f32.mrf.mxu0 }
 0x10e   :  { %v2857_v2 = vadd.f32 %v219_v1, %v103_v35 }
 0x10f   :  { %v223_v5 = vpop.f32.mrf.mxu0 }
 0x110   :  { %v2859_v6 = vadd.f32 %v223_v5, %v99_v34 }
 0x111   :  { %v225_v9 = vpop.f32.mrf.mxu0 }
 0x112   :  { %v2861_v10 = vadd.f32 %v225_v9, %v103_v35 }
 0x113   :  { %v227_v12 = vpop.f32.mrf.mxu0 }
 0x114   :  { %v2863_v15 = vadd.f32 %v227_v12, %v99_v34 }
 0x115   :  { %v229_v16 = vpop.f32.mrf.mxu0 }
 0x116   :  { %v230_v17 = vadd.f32 %v229_v16, %v103_v35 }
 0x118   :  { %v341_v19 = vadd.f32 %v311_v43, %v230_v17 }
 0x11a   :  { %2382 = vtanh.f32 %v341_v19  ;;  %v2229_v24 = vmul.f32 -1.442695, %v341_v19 }
 0x11b   :  { %2384 = vpow2.f32 %v2228_v21 }
 0x127   :  { %v2383_v20 = vpop.eup %2382 }
 0x128   :  { %351 = vrot.lane.b32.xlu0 %v2383_v20, %s2722_s13  ;;  %v2385_v22 = vpop.eup %2384 }
 0x129   :  { %v320_v23 = vadd.f32 1.0, %v2385_v22 }
 0x12b   :  { %2386 = vrcp.f32 %v320_v23 }
 0x12c   :  { %2388 = vpow2.f32 %v2229_v24 }
 0x138   :  { %v2387_v25 = vpop.eup %2386 }
 0x139   :  { %v2389_v28 = vpop.eup %2388  ;;  %v324_v36 = vmul.f32 0.0, %v2387_v25 }
 0x13a   :  { %v345_v29 = vadd.f32 1.0, %v2389_v28 }
 0x13c   :  { %2390 = vrcp.f32 %v345_v29 }
 0x149   :  { %v2391_v32 = vpop.eup %2390 }
 0x14a   :  { %v349_v41 = vmul.f32 0.0, %v2391_v32 }
 0x17c   :  { %v327_v26 = vpop.permute.xlu0 %326 }
 0x17d   :  { %v329_v27 = vmul.f32 %v2387_v25, %v327_v26 }
 0x17f   :  { %331 = vrot.lane.b32.xlu1 %v329_v27, %s2723_s14 }
 0x19a   :  { %v352_v34 = vpop.permute.xlu0 %351 }
 0x19b   :  { %v354_v35 = vmul.f32 %v2391_v32, %v352_v34 }
 0x19d   :  { %356 = vrot.lane.b32.xlu1 %v354_v35, %s2723_s14 }
 0x1f1   :  { %v332_v37 = vpop.permute.xlu1 %331 }
 0x1f2   :  { %v334_v38 = vadd.f32 %v332_v37, %v324_v36 }
 0x1f4   :  { %2392 = vtanh.f32 %v334_v38 }
 0x201   :  { %v2393_v39 = vpop.eup %2392 }
 0x202   :  { %337 = vrot.lane.b32.xlu0 %v2393_v39, %s2722_s13 }
 0x20f   :  { %v357_v42 = vpop.permute.xlu1 %356 }
 0x210   :  { %v359_v43 = vadd.f32 %v357_v42, %v349_v41 }
 0x212   :  { %2394 = vtanh.f32 %v359_v43 }
 0x21f   :  { %v2395_v45 = vpop.eup %2394 }
 0x220   :  { %362 = vrot.lane.b32.xlu1 %v2395_v45, %s2722_s13 }
 0x274   :  { %v338_v46 = vpop.permute.xlu0 %337 }
 0x275   :  { %v340_v48 = vmul.f32 %v2387_v25, %v338_v46 }
 0x277   :  { %367 = vrot.lane.b32.xlu0 %v340_v48, %s2723_s14 }
 0x292   :  { %v363_v49 = vpop.permute.xlu1 %362 }
 0x293   :  { %v365_v51 = vmul.f32 %v2391_v32, %v363_v49 }
 0x295   :  { %371 = vrot.lane.b32.xlu1 %v365_v51, %s2722_s13 }
 0x2e9   :  { %v2872_v53 = vpop.permute.xlu0 %367 }
 0x307   :  { %v2874_v55 = vpop.permute.xlu1 %371 }
 0x308   :  { %v375_v57 = vsel %vm374_vm1, %v2872_v53, %v2874_v55 }
 0x309   :  { %v376_v59 = vpack.c.bf16 %v375_v57, %v375_v57 }
 0x30b   :  { %2230 = vmatmul.mubr.msk.bf16.vlgmr.msra.gmra.mxu1 %vm146_vm0, %v376_v59 }
 0x30c   :  { %597 = vmatpush1.bf16.msra.mxu1 %v2775_v4  ;;  %620 = vmatprep.mubr.bf16.mxu1 %v2721_v0 }
 0x30d   :  { %598 = vmatprep.subr.bf16.mxu1 %v2778_v7 }
 0x310   :  { %599 = vmatpush1.bf16.msra.mxu1 %v2781_v8 }
 0x311   :  { %600 = vmatprep.subr.bf16.mxu1 %v2784_v11 }
 0x314   :  { %601 = vmatpush1.bf16.msra.mxu1 %v2787_v13 }
 0x315   :  { %602 = vmatprep.subr.bf16.mxu1 %v2790_v14 }
 0x318   :  { %603 = vmatpush1.bf16.msra.mxu1 %v2793_v18 }
 0x319   :  { %804 = vmatprep.subr.bf16.mxu1 %v2773_v3 }
 0x3cb   :  { %v414_v60 = vpop.f32.mrf.mxu1 }
 0x3cc   :  { %v421_v62 = vadd.f32 %v414_v60, %v2838_v44 }
 0x3cd   :  { %v416_v1 = vpop.f32.mrf.mxu1 }
 0x3ce   :  { %2396 = vtanh.f32 %v421_v62  ;;  %v446_v5 = vadd.f32 %v416_v1, %v2861_v10  ;;  %v2231_v19 = vmul.f32 -1.442695, %v421_v62 }
 0x3cf   :  { %v418_v9 = vpop.f32.mrf.mxu1 }
 0x3d0   :  { %2398 = vtanh.f32 %v446_v5  ;;  %v2232_v20 = vmul.f32 -1.442695, %v446_v5 }
 0x3d1   :  { %v419_v12 = vpop.f32.mrf.mxu1  ;;  %2400 = vpow2.f32 %v2231_v19 }
 0x3d2   :  { %2402 = vpow2.f32 %v2232_v20 }
 0x3db   :  { %v2397_v16 = vpop.eup %2396 }
 0x3dc   :  { %431 = vrot.lane.b32.xlu0 %v2397_v16, %s2722_s13 }
 0x3dd   :  { %v2399_v17 = vpop.eup %2398 }
 0x3de   :  { %456 = vrot.lane.b32.xlu1 %v2399_v17, %s2722_s13  ;;  %v2401_v21 = vpop.eup %2400 }
 0x3df   :  { %v2403_v22 = vpop.eup %2402  ;;  %v425_v44 = vadd.f32 1.0, %v2401_v21 }
 0x3e0   :  { %v450_v23 = vadd.f32 1.0, %v2403_v22 }
 0x3e1   :  { %2404 = vrcp.f32 %v425_v44 }
 0x3e2   :  { %2406 = vrcp.f32 %v450_v23 }
 0x3ee   :  { %v2405_v10 = vpop.eup %2404 }
 0x3ef   :  { %v2407_v26 = vpop.eup %2406  ;;  %v429_v29 = vmul.f32 %v2405_v10, %v334_v38 }
 0x3f0   :  { %v454_v35 = vmul.f32 %v2407_v26, %v359_v43 }
 0x44e   :  { %v432_v24 = vpop.permute.xlu0 %431 }
 0x44f   :  { %v434_v25 = vmul.f32 %v2405_v10, %v432_v24 }
 0x450   :  { %v457_v27 = vpop.permute.xlu1 %456 }
 0x451   :  { %436 = vrot.lane.b32.xlu0 %v434_v25, %s2723_s14  ;;  %v459_v28 = vmul.f32 %v2407_v26, %v457_v27 }
 0x453   :  { %461 = vrot.lane.b32.xlu1 %v459_v28, %s2723_s14 }
 0x4c3   :  { %v437_v32 = vpop.permute.xlu0 %436 }
 0x4c4   :  { %v439_v34 = vadd.f32 %v437_v32, %v429_v29 }
 0x4c5   :  { %v462_v36 = vpop.permute.xlu1 %461 }
 0x4c6   :  { %2408 = vtanh.f32 %v439_v34  ;;  %v464_v37 = vadd.f32 %v462_v36, %v454_v35 }
 0x4c8   :  { %2410 = vtanh.f32 %v464_v37 }
 0x4d3   :  { %v2409_v39 = vpop.eup %2408 }
 0x4d4   :  { %442 = vrot.lane.b32.xlu0 %v2409_v39, %s2722_s13 }
 0x4d5   :  { %v2411_v41 = vpop.eup %2410 }
 0x4d6   :  { %467 = vrot.lane.b32.xlu1 %v2411_v41, %s2722_s13 }
 0x546   :  { %v443_v42 = vpop.permute.xlu0 %442 }
 0x547   :  { %v445_v45 = vmul.f32 %v2405_v10, %v443_v42 }
 0x548   :  { %v468_v46 = vpop.permute.xlu1 %467 }
 0x549   :  { %472 = vrot.lane.b32.xlu0 %v445_v45, %s2723_s14  ;;  %v470_v48 = vmul.f32 %v2407_v26, %v468_v46 }
 0x54b   :  { %476 = vrot.lane.b32.xlu1 %v470_v48, %s2722_s13 }
 0x5bb   :  { %v2899_v38 = vpop.permute.xlu0 %472 }
 0x5bd   :  { %v2901_v43 = vpop.permute.xlu1 %476 }
 0x5be   :  { %v479_v49 = vsel %vm374_vm1, %v2899_v38, %v2901_v43 }
 0x5bf   :  { %v480_v51 = vpack.c.bf16 %v479_v49, %v479_v49 }
 0x5c1   :  { %2233 = vmatmul.mubr.msk.bf16.vlgmr.msra.gmra.mxu0 %vm146_vm0, %v480_v51 }
 0x5c2   :  { %701 = vmatpush1.bf16.msra.mxu0 %v2775_v4  ;;  %724 = vmatprep.mubr.bf16.mxu0 %v2721_v0 }
 0x5c3   :  { %702 = vmatprep.subr.bf16.mxu0 %v2778_v7 }
 0x5c6   :  { %703 = vmatpush1.bf16.msra.mxu0 %v2781_v8 }
 0x5c7   :  { %704 = vmatprep.subr.bf16.mxu0 %v2784_v11 }
 0x5ca   :  { %705 = vmatpush1.bf16.msra.mxu0 %v2787_v13 }
 0x5cb   :  { %706 = vmatprep.subr.bf16.mxu0 %v2790_v14 }
 0x5ce   :  { %707 = vmatpush1.bf16.msra.mxu0 %v2793_v18 }
 0x5cf   :  { %908 = vmatprep.subr.bf16.mxu0 %v2773_v3 }
 0x681   :  { %v518_v57 = vpop.f32.mrf.mxu0 }
 0x682   :  { %v525_v59 = vadd.f32 %v518_v57, %v2842_v50 }
 0x683   :  { %v520_v60 = vpop.f32.mrf.mxu0 }
 0x684   :  { %2412 = vtanh.f32 %v525_v59  ;;  %v550_v62 = vadd.f32 %v520_v60, %v2857_v2  ;;  %v2234_v16 = vmul.f32 -1.442695, %v525_v59 }
 0x685   :  { %v522_v1 = vpop.f32.mrf.mxu0 }
 0x686   :  { %2414 = vtanh.f32 %v550_v62  ;;  %v2235_v17 = vmul.f32 -1.442695, %v550_v62 }
 0x687   :  { %v523_v5 = vpop.f32.mrf.mxu0  ;;  %2416 = vpow2.f32 %v2234_v16 }
 0x688   :  { %2418 = vpow2.f32 %v2235_v17 }
 0x691   :  { %v2413_v9 = vpop.eup %2412 }
 0x692   :  { %535 = vrot.lane.b32.xlu0 %v2413_v9, %s2722_s13 }
 0x693   :  { %v2415_v12 = vpop.eup %2414 }
 0x694   :  { %560 = vrot.lane.b32.xlu1 %v2415_v12, %s2722_s13  ;;  %v2417_v19 = vpop.eup %2416 }
 0x695   :  { %v2419_v20 = vpop.eup %2418  ;;  %v529_v50 = vadd.f32 1.0, %v2417_v19 }
 0x696   :  { %v554_v21 = vadd.f32 1.0, %v2419_v20 }
 0x697   :  { %2420 = vrcp.f32 %v529_v50 }
 0x698   :  { %2422 = vrcp.f32 %v554_v21 }
 0x6a4   :  { %v2421_v2 = vpop.eup %2420 }
 0x6a5   :  { %v2423_v23 = vpop.eup %2422  ;;  %v533_v25 = vmul.f32 %v2421_v2, %v439_v34 }
 0x6a6   :  { %v558_v28 = vmul.f32 %v2423_v23, %v464_v37 }
 0x704   :  { %v536_v22 = vpop.permute.xlu0 %535 }
 0x705   :  { %v538_v44 = vmul.f32 %v2421_v2, %v536_v22 }
 0x706   :  { %v561_v10 = vpop.permute.xlu1 %560 }
 0x707   :  { %540 = vrot.lane.b32.xlu0 %v538_v44, %s2723_s14  ;;  %v563_v24 = vmul.f32 %v2423_v23, %v561_v10 }
 0x709   :  { %565 = vrot.lane.b32.xlu1 %v563_v24, %s2723_s14 }
 0x779   :  { %v541_v26 = vpop.permute.xlu0 %540 }
 0x77a   :  { %v543_v27 = vadd.f32 %v541_v26, %v533_v25 }
 0x77b   :  { %v566_v29 = vpop.permute.xlu1 %565 }
 0x77c   :  { %2424 = vtanh.f32 %v543_v27  ;;  %v568_v32 = vadd.f32 %v566_v29, %v558_v28 }
 0x77e   :  { %2426 = vtanh.f32 %v568_v32 }
 0x789   :  { %v2425_v35 = vpop.eup %2424 }
 0x78a   :  { %546 = vrot.lane.b32.xlu0 %v2425_v35, %s2722_s13 }
 0x78b   :  { %v2427_v36 = vpop.eup %2426 }
 0x78c   :  { %571 = vrot.lane.b32.xlu1 %v2427_v36, %s2722_s13 }
 0x7fc   :  { %v547_v39 = vpop.permute.xlu0 %546 }
 0x7fd   :  { %v549_v41 = vmul.f32 %v2421_v2, %v547_v39 }
 0x7fe   :  { %v572_v42 = vpop.permute.xlu1 %571 }
 0x7ff   :  { %576 = vrot.lane.b32.xlu0 %v549_v41, %s2723_s14  ;;  %v574_v45 = vmul.f32 %v2423_v23, %v572_v42 }
 0x801   :  { %580 = vrot.lane.b32.xlu1 %v574_v45, %s2722_s13 }
 0x871   :  { %v2926_v34 = vpop.permute.xlu0 %576 }
 0x873   :  { %v2928_v37 = vpop.permute.xlu1 %580 }
 0x874   :  { %v583_v46 = vsel %vm374_vm1, %v2926_v34, %v2928_v37 }
 0x875   :  { %v584_v48 = vpack.c.bf16 %v583_v46, %v583_v46 }
 0x877   :  { %2236 = vmatmul.mubr.msk.bf16.vlgmr.msra.gmra.mxu1 %vm146_vm0, %v584_v48 }
 0x878   :  { %805 = vmatpush1.bf16.msra.mxu1 %v2775_v4  ;;  %828 = vmatprep.mubr.bf16.mxu1 %v2721_v0 }
 0x879   :  { %806 = vmatprep.subr.bf16.mxu1 %v2778_v7 }
 0x87c   :  { %807 = vmatpush1.bf16.msra.mxu1 %v2781_v8 }
 0x87d   :  { %808 = vmatprep.subr.bf16.mxu1 %v2784_v11 }
 0x880   :  { %809 = vmatpush1.bf16.msra.mxu1 %v2787_v13 }
 0x881   :  { %810 = vmatprep.subr.bf16.mxu1 %v2790_v14 }
 0x884   :  { %811 = vmatpush1.bf16.msra.mxu1 %v2793_v18 }
 0x885   :  { %1012 = vmatprep.subr.bf16.mxu1 %v2773_v3 }
 0x937   :  { %v622_v49 = vpop.f32.mrf.mxu1 }
 0x938   :  { %v629_v51 = vadd.f32 %v622_v49, %v2846_v54 }
 0x939   :  { %v624_v57 = vpop.f32.mrf.mxu1 }
 0x93a   :  { %2428 = vtanh.f32 %v629_v51  ;;  %v654_v59 = vadd.f32 %v624_v57, %v2852_v61  ;;  %v2237_v9 = vmul.f32 -1.442695, %v629_v51 }
 0x93b   :  { %v626_v60 = vpop.f32.mrf.mxu1 }
 0x93c   :  { %2430 = vtanh.f32 %v654_v59  ;;  %v2238_v12 = vmul.f32 -1.442695, %v654_v59 }
 0x93d   :  { %v627_v62 = vpop.f32.mrf.mxu1  ;;  %2432 = vpow2.f32 %v2237_v9 }
 0x93e   :  { %2434 = vpow2.f32 %v2238_v12 }
 0x947   :  { %v2429_v1 = vpop.eup %2428 }
 0x948   :  { %639 = vrot.lane.b32.xlu0 %v2429_v1, %s2722_s13 }
 0x949   :  { %v2431_v5 = vpop.eup %2430 }
 0x94a   :  { %664 = vrot.lane.b32.xlu1 %v2431_v5, %s2722_s13  ;;  %v2433_v3 = vpop.eup %2432 }
 0x94b   :  { %v2435_v16 = vpop.eup %2434  ;;  %v633_v54 = vadd.f32 1.0, %v2433_v3 }
 0x94c   :  { %v658_v17 = vadd.f32 1.0, %v2435_v16 }
 0x94d   :  { %2436 = vrcp.f32 %v633_v54 }
 0x94e   :  { %2438 = vrcp.f32 %v658_v17 }
 0x95a   :  { %v2437_v61 = vpop.eup %2436 }
 0x95b   :  { %v2439_v50 = vpop.eup %2438  ;;  %v637_v22 = vmul.f32 %v2437_v61, %v543_v27 }
 0x95c   :  { %v662_v10 = vmul.f32 %v2439_v50, %v568_v32 }
 0x9ba   :  { %v640_v19 = vpop.permute.xlu0 %639 }
 0x9bb   :  { %v642_v20 = vmul.f32 %v2437_v61, %v640_v19 }
 0x9bc   :  { %v665_v21 = vpop.permute.xlu1 %664 }
 0x9bd   :  { %644 = vrot.lane.b32.xlu0 %v642_v20, %s2723_s14  ;;  %v667_v2 = vmul.f32 %v2439_v50, %v665_v21 }
 0x9bf   :  { %669 = vrot.lane.b32.xlu1 %v667_v2, %s2723_s14 }
 0xa2f   :  { %v645_v44 = vpop.permute.xlu0 %644 }
 0xa30   :  { %v647_v23 = vadd.f32 %v645_v44, %v637_v22 }
 0xa31   :  { %v670_v24 = vpop.permute.xlu1 %669 }
 0xa32   :  { %2440 = vtanh.f32 %v647_v23  ;;  %v672_v25 = vadd.f32 %v670_v24, %v662_v10 }
 0xa34   :  { %2442 = vtanh.f32 %v672_v25 }
 0xa3f   :  { %v2441_v26 = vpop.eup %2440 }
 0xa40   :  { %650 = vrot.lane.b32.xlu0 %v2441_v26, %s2722_s13 }
 0xa41   :  { %v2443_v28 = vpop.eup %2442 }
 0xa42   :  { %675 = vrot.lane.b32.xlu1 %v2443_v28, %s2722_s13 }
 0xab2   :  { %v651_v29 = vpop.permute.xlu0 %650 }
 0xab3   :  { %v653_v35 = vmul.f32 %v2437_v61, %v651_v29 }
 0xab4   :  { %v676_v36 = vpop.permute.xlu1 %675 }
 0xab5   :  { %680 = vrot.lane.b32.xlu0 %v653_v35, %s2723_s14  ;;  %v678_v39 = vmul.f32 %v2439_v50, %v676_v36 }
 0xab7   :  { %684 = vrot.lane.b32.xlu1 %v678_v39, %s2722_s13 }
 0xb27   :  { %v2953_v27 = vpop.permute.xlu0 %680 }
 0xb29   :  { %v2955_v32 = vpop.permute.xlu1 %684 }
 0xb2a   :  { %v687_v41 = vsel %vm374_vm1, %v2953_v27, %v2955_v32 }
 0xb2b   :  { %v688_v42 = vpack.c.bf16 %v687_v41, %v687_v41 }
 0xb2d   :  { %2239 = vmatmul.mubr.msk.bf16.vlgmr.msra.gmra.mxu0 %vm146_vm0, %v688_v42 }
 0xb2e   :  { %909 = vmatpush1.bf16.msra.mxu0 %v2775_v4  ;;  %932 = vmatprep.mubr.bf16.mxu0 %v2721_v0 }
 0xb2f   :  { %910 = vmatprep.subr.bf16.mxu0 %v2778_v7 }
 0xb32   :  { %911 = vmatpush1.bf16.msra.mxu0 %v2781_v8 }
 0xb33   :  { %912 = vmatprep.subr.bf16.mxu0 %v2784_v11 }
 0xb36   :  { %913 = vmatpush1.bf16.msra.mxu0 %v2787_v13 }
 0xb37   :  { %914 = vmatprep.subr.bf16.mxu0 %v2790_v14 }
 0xb3a   :  { %915 = vmatpush1.bf16.msra.mxu0 %v2793_v18 }
 0xbed   :  { %v726_v45 = vpop.f32.mrf.mxu0 }
 0xbee   :  { %v733_v46 = vadd.f32 %v726_v45, %v2850_v58 }
 0xbef   :  { %v728_v48 = vpop.f32.mrf.mxu0 }
 0xbf0   :  { %2444 = vtanh.f32 %v733_v46  ;;  %v758_v49 = vadd.f32 %v728_v48, %v2848_v56  ;;  %v2240_v62 = vmul.f32 -1.442695, %v733_v46 }
 0xbf1   :  { %v730_v51 = vpop.f32.mrf.mxu0 }
 0xbf2   :  { %2446 = vtanh.f32 %v758_v49  ;;  %v2241_v1 = vmul.f32 -1.442695, %v758_v49 }
 0xbf3   :  { %v731_v57 = vpop.f32.mrf.mxu0  ;;  %2448 = vpow2.f32 %v2240_v62 }
 0xbf4   :  { %2450 = vpow2.f32 %v2241_v1 }
 0xbfd   :  { %v2445_v59 = vpop.eup %2444 }
 0xbfe   :  { %743 = vrot.lane.b32.xlu0 %v2445_v59, %s2722_s13 }
 0xbff   :  { %v2447_v60 = vpop.eup %2446 }
 0xc00   :  { %768 = vrot.lane.b32.xlu1 %v2447_v60, %s2722_s13  ;;  %v2449_v5 = vpop.eup %2448 }
 0xc01   :  { %v2451_v9 = vpop.eup %2450  ;;  %v737_v58 = vadd.f32 1.0, %v2449_v5 }
 0xc02   :  { %v762_v12 = vadd.f32 1.0, %v2451_v9 }
 0xc03   :  { %2452 = vrcp.f32 %v737_v58 }
 0xc04   :  { %2454 = vrcp.f32 %v762_v12 }
 0xc10   :  { %v2453_v56 = vpop.eup %2452 }
 0xc11   :  { %v2455_v54 = vpop.eup %2454  ;;  %v741_v19 = vmul.f32 %v2453_v56, %v647_v23 }
 0xc12   :  { %v766_v21 = vmul.f32 %v2455_v54, %v672_v25 }
 0xc70   :  { %v744_v3 = vpop.permute.xlu0 %743 }
 0xc71   :  { %v746_v16 = vmul.f32 %v2453_v56, %v744_v3 }
 0xc72   :  { %v769_v17 = vpop.permute.xlu1 %768 }
 0xc73   :  { %748 = vrot.lane.b32.xlu0 %v746_v16, %s2723_s14  ;;  %v771_v61 = vmul.f32 %v2455_v54, %v769_v17 }
 0xc75   :  { %773 = vrot.lane.b32.xlu1 %v771_v61, %s2723_s14 }
 0xce5   :  { %v749_v20 = vpop.permute.xlu0 %748 }
 0xce6   :  { %v751_v50 = vadd.f32 %v749_v20, %v741_v19 }
 0xce7   :  { %v774_v2 = vpop.permute.xlu1 %773 }
 0xce8   :  { %2456 = vtanh.f32 %v751_v50  ;;  %v776_v22 = vadd.f32 %v774_v2, %v766_v21 }
 0xcea   :  { %2458 = vtanh.f32 %v776_v22 }
 0xcf5   :  { %v2457_v44 = vpop.eup %2456 }
 0xcf6   :  { %754 = vrot.lane.b32.xlu0 %v2457_v44, %s2722_s13 }
 0xcf7   :  { %v2459_v10 = vpop.eup %2458 }
 0xcf8   :  { %779 = vrot.lane.b32.xlu1 %v2459_v10, %s2722_s13 }
 0xd68   :  { %v755_v24 = vpop.permute.xlu0 %754 }
 0xd69   :  { %v757_v26 = vmul.f32 %v2453_v56, %v755_v24 }
 0xd6a   :  { %v780_v28 = vpop.permute.xlu1 %779 }
 0xd6b   :  { %784 = vrot.lane.b32.xlu0 %v757_v26, %s2723_s14  ;;  %v782_v29 = vmul.f32 %v2455_v54, %v780_v28 }
 0xd6d   :  { %788 = vrot.lane.b32.xlu1 %v782_v29, %s2722_s13 }
 0xddd   :  { %v2979_v23 = vpop.permute.xlu0 %784 }
 0xddf   :  { %v2981_v25 = vpop.permute.xlu1 %788 }
 0xde0   :  { %v791_v35 = vsel %vm374_vm1, %v2979_v23, %v2981_v25 }
 0xde1   :  { %v792_v36 = vpack.c.bf16 %v791_v35, %v791_v35 }
 0xde3   :  { %2242 = vmatmul.mubr.msk.bf16.vlgmr.msra.gmra.mxu1 %vm146_vm0, %v792_v36 }
 0xde4   :  { %1013 = vmatpush1.bf16.msra.mxu1 %v2775_v4  ;;  %1036 = vmatprep.mubr.bf16.mxu1 %v2721_v0 }
 0xde5   :  { %1014 = vmatprep.subr.bf16.mxu1 %v2778_v7 }
 0xde8   :  { %1015 = vmatpush1.bf16.msra.mxu1 %v2781_v8 }
 0xde9   :  { %1016 = vmatprep.subr.bf16.mxu1 %v2784_v11 }
 0xdec   :  { %1017 = vmatpush1.bf16.msra.mxu1 %v2787_v13 }
 0xded   :  { %1018 = vmatprep.subr.bf16.mxu1 %v2790_v14 }
 0xdf0   :  { %1019 = vmatpush1.bf16.msra.mxu1 %v2793_v18 }
 0xea3   :  { %v830_v39 = vpop.f32.mrf.mxu1 }
 0xea4   :  { %v837_v41 = vadd.f32 %v830_v39, %v2855_v63 }
 0xea5   :  { %v832_v42 = vpop.f32.mrf.mxu1 }
 0xea6   :  { %2460 = vtanh.f32 %v837_v41  ;;  %v862_v4 = vadd.f32 %v832_v42, %v2844_v52  ;;  %v2243_v11 = vmul.f32 -1.442695, %v837_v41 }
 0xea7   :  { %v834_v45 = vpop.f32.mrf.mxu1 }
 0xea8   :  { %2462 = vtanh.f32 %v862_v4  ;;  %v2244_v13 = vmul.f32 -1.442695, %v862_v4 }
 0xea9   :  { %v835_v7 = vpop.f32.mrf.mxu1  ;;  %2464 = vpow2.f32 %v2243_v11 }
 0xeaa   :  { %2466 = vpow2.f32 %v2244_v13 }
 0xeb3   :  { %v2461_v46 = vpop.eup %2460 }
 0xeb4   :  { %847 = vrot.lane.b32.xlu0 %v2461_v46, %s2722_s13 }
 0xeb5   :  { %v2463_v8 = vpop.eup %2462 }
 0xeb6   :  { %872 = vrot.lane.b32.xlu1 %v2463_v8, %s2722_s13  ;;  %v2465_v14 = vpop.eup %2464 }
 0xeb7   :  { %v2467_v18 = vpop.eup %2466  ;;  %v841_v63 = vadd.f32 1.0, %v2465_v14 }
 0xeb8   :  { %v866_v48 = vadd.f32 1.0, %v2467_v18 }
 0xeb9   :  { %2468 = vrcp.f32 %v841_v63 }
 0xeba   :  { %2470 = vrcp.f32 %v866_v48 }
 0xec6   :  { %v2469_v52 = vpop.eup %2468 }
 0xec7   :  { %v2471_v57 = vpop.eup %2470  ;;  %v845_v62 = vmul.f32 %v2469_v52, %v751_v50 }
 0xec8   :  { %v870_v9 = vmul.f32 %v2471_v57, %v776_v22 }
 0xf26   :  { %v848_v49 = vpop.permute.xlu0 %847 }
 0xf27   :  { %v850_v51 = vmul.f32 %v2469_v52, %v848_v49 }
 0xf28   :  { %v873_v59 = vpop.permute.xlu1 %872 }
 0xf29   :  { %852 = vrot.lane.b32.xlu0 %v850_v51, %s2723_s14  ;;  %v875_v60 = vmul.f32 %v2471_v57, %v873_v59 }
 0xf2b   :  { %877 = vrot.lane.b32.xlu1 %v875_v60, %s2723_s14 }
 0xf9b   :  { %v853_v1 = vpop.permute.xlu0 %852 }
 0xf9c   :  { %v855_v5 = vadd.f32 %v853_v1, %v845_v62 }
 0xf9d   :  { %v878_v58 = vpop.permute.xlu1 %877 }
 0xf9e   :  { %2472 = vtanh.f32 %v855_v5  ;;  %v880_v12 = vadd.f32 %v878_v58, %v870_v9 }
 0xfa0   :  { %2474 = vtanh.f32 %v880_v12 }
 0xfab   :  { %v2473_v56 = vpop.eup %2472 }
 0xfac   :  { %858 = vrot.lane.b32.xlu0 %v2473_v56, %s2722_s13 }
 0xfad   :  { %v2475_v3 = vpop.eup %2474 }
 0xfae   :  { %883 = vrot.lane.b32.xlu1 %v2475_v3, %s2722_s13 }
0x101e   :  { %v859_v16 = vpop.permute.xlu0 %858 }
0x101f   :  { %v861_v54 = vmul.f32 %v2469_v52, %v859_v16 }
0x1020   :  { %v884_v17 = vpop.permute.xlu1 %883 }
0x1021   :  { %888 = vrot.lane.b32.xlu0 %v861_v54, %s2723_s14  ;;  %v886_v61 = vmul.f32 %v2471_v57, %v884_v17 }
0x1023   :  { %892 = vrot.lane.b32.xlu1 %v886_v61, %s2722_s13 }
0x1093   :  { %v3005_v19 = vpop.permute.xlu0 %888 }
0x1095   :  { %v3007_v20 = vpop.permute.xlu1 %892 }
0x1096   :  { %v895_v50 = vsel %vm374_vm1, %v3005_v19, %v3007_v20 }
0x1097   :  { %v896_v21 = vpack.c.bf16 %v895_v50, %v895_v50 }
0x1099   :  { %2245 = vmatmul.mubr.msk.bf16.vlgmr.msra.gmra.mxu0 %vm146_vm0, %v896_v21 }
0x109a   :  { %1228 = vmatprep.mubr.bf16.mxu0 %v2721_v0 }
0x1159   :  { %v934_v2 = vpop.f32.mrf.mxu0 }
0x115a   :  { %v941_v22 = vadd.f32 %v934_v2, %v2859_v6 }
0x115b   :  { %v936_v44 = vpop.f32.mrf.mxu0 }
0x115c   :  { %2476 = vtanh.f32 %v941_v22  ;;  %v966_v10 = vadd.f32 %v936_v44, %v2840_v47  ;;  %v2246_v35 = vmul.f32 -1.442695, %v941_v22 }
0x115d   :  { %v938_v24 = vpop.f32.mrf.mxu0 }
0x115e   :  { %2478 = vtanh.f32 %v966_v10  ;;  %v2247_v36 = vmul.f32 -1.442695, %v966_v10 }
0x115f   :  { %v939_v26 = vpop.f32.mrf.mxu0  ;;  %2480 = vpow2.f32 %v2246_v35 }
0x1160   :  { %2482 = vpow2.f32 %v2247_v36 }
0x1169   :  { %v2477_v28 = vpop.eup %2476 }
0x116a   :  { %951 = vrot.lane.b32.xlu0 %v2477_v28, %s2722_s13 }
0x116b   :  { %v2479_v29 = vpop.eup %2478 }
0x116c   :  { %976 = vrot.lane.b32.xlu1 %v2479_v29, %s2722_s13  ;;  %v2481_v39 = vpop.eup %2480 }
0x116d   :  { %v2483_v41 = vpop.eup %2482  ;;  %v945_v6 = vadd.f32 1.0, %v2481_v39 }
0x116e   :  { %v970_v42 = vadd.f32 1.0, %v2483_v41 }
0x116f   :  { %2484 = vrcp.f32 %v945_v6 }
0x1170   :  { %2486 = vrcp.f32 %v970_v42 }
0x117c   :  { %v2485_v47 = vpop.eup %2484 }
0x117d   :  { %v2487_v7 = vpop.eup %2486  ;;  %v949_v11 = vmul.f32 %v2485_v47, %v855_v5 }
0x117e   :  { %v974_v18 = vmul.f32 %v2487_v7, %v880_v12 }
0x11dc   :  { %v952_v4 = vpop.permute.xlu0 %951 }
0x11dd   :  { %v954_v45 = vmul.f32 %v2485_v47, %v952_v4  ;;  %v2354_v4 = vld [vmem:[#allocation5 + $0x74] ss:$8 sps:$4 sm:$0xff]  }
0x11de   :  { %v977_v46 = vpop.permute.xlu1 %976  ;;  %1204 = vmatprep.subr.bf16.mxu0 %v2354_v4 }
0x11df   :  { %956 = vrot.lane.b32.xlu0 %v954_v45, %s2723_s14  ;;  %v979_v8 = vmul.f32 %v2487_v7, %v977_v46  ;;  %v3039_v45 = vld [vmem:[#allocation7 + $0x74] ss:$8 sps:$4 sm:$0xff]   ;;  %v2360_v46 = vld [vmem:[#allocation5 + $0x64] ss:$8 sps:$4 sm:$0xff]  }
0x11e0   :  { %1316 = vmatprep.subr.bf16.mxu1 %v3039_v45 }
0x11e1   :  { %981 = vrot.lane.b32.xlu1 %v979_v8, %s2723_s14  ;;  %v3044_v8 = vld [vmem:[#allocation7 + $0x64] ss:$8 sps:$4 sm:$0xff]  }
0x1251   :  { %v957_v13 = vpop.permute.xlu0 %956 }
0x1252   :  { %v959_v14 = vadd.f32 %v957_v13, %v949_v11  ;;  %v2358_v11 = vld [vmem:[#allocation5 + $0x60] ss:$8 sps:$4 sm:$0xff]  }
0x1253   :  { %v982_v63 = vpop.permute.xlu1 %981  ;;  %v3047_v13 = vld [vmem:[#allocation7 + $0x60] ss:$8 sps:$4 sm:$0xff]  }
0x1254   :  { %2488 = vtanh.f32 %v959_v14  ;;  %v984_v48 = vadd.f32 %v982_v63, %v974_v18  ;;  %v3050_v18 = vld [vmem:[#allocation7 + $0x54] ss:$8 sps:$4 sm:$0xff]  }
0x1256   :  { %2490 = vtanh.f32 %v984_v48 }
0x1261   :  { %v2489_v52 = vpop.eup %2488 }
0x1262   :  { %962 = vrot.lane.b32.xlu0 %v2489_v52, %s2722_s13 }
0x1263   :  { %v2491_v49 = vpop.eup %2490 }
0x1264   :  { %987 = vrot.lane.b32.xlu1 %v2491_v49, %s2722_s13  ;;  %v3056_v49 = vld [vmem:[#allocation7 + $0x50] ss:$8 sps:$4 sm:$0xff]  }
0x12d4   :  { %v963_v51 = vpop.permute.xlu0 %962 }
0x12d5   :  { %v965_v57 = vmul.f32 %v2485_v47, %v963_v51  ;;  %v2352_v47 = vld [vmem:[#allocation5 + $0x70] ss:$8 sps:$4 sm:$0xff]   ;;  %v2372_v51 = vld [vmem:[#allocation5 + $0x44] ss:$8 sps:$4 sm:$0xff]  }
0x12d6   :  { %v988_v59 = vpop.permute.xlu1 %987  ;;  %1205 = vmatpush1.bf16.msra.mxu0 %v2352_v47 }
0x12d7   :  { %992 = vrot.lane.b32.xlu0 %v965_v57, %s2723_s14  ;;  %v990_v60 = vmul.f32 %v2487_v7, %v988_v59  ;;  %v3041_v7 = vld [vmem:[#allocation7 + $0x70] ss:$8 sps:$4 sm:$0xff]   ;;  %1206 = vmatprep.subr.bf16.mxu0 %v2360_v46  ;;  %v2370_v57 = vld [vmem:[#allocation5 + $0x40] ss:$8 sps:$4 sm:$0xff]   ;;  %v3059_v59 = vld [vmem:[#allocation7 + $0x44] ss:$8 sps:$4 sm:$0xff]  }
0x12d9   :  { %996 = vrot.lane.b32.xlu1 %v990_v60, %s2722_s13  ;;  %v3061_v60 = vld [vmem:[#allocation7 + $0x40] ss:$8 sps:$4 sm:$0xff]  }
0x12da   :  { %1207 = vmatpush1.bf16.msra.mxu0 %v2358_v11 }
0x1349   :  { %v3024_v62 = vpop.permute.xlu0 %992 }
0x134b   :  { %v3026_v1 = vpop.permute.xlu1 %996 }
0x134c   :  { %v999_v5 = vsel %vm374_vm1, %v3024_v62, %v3026_v1 }
0x134d   :  { %v1000_v9 = vpack.c.bf16 %v999_v5, %v999_v5 }
0x134f   :  { %2248 = vmatmul.mubr.msk.bf16.vlgmr.msra.gmra.mxu1 %vm146_vm0, %v1000_v9 }
0x1350   :  { %1340 = vmatprep.mubr.bf16.mxu1 %v2721_v0  ;;  %1317 = vmatpush1.bf16.msra.mxu1 %v3041_v7 }
0x1351   :  { %1318 = vmatprep.subr.bf16.mxu1 %v3044_v8 }
0x1354   :  { %1319 = vmatpush1.bf16.msra.mxu1 %v3047_v13 }
0x1355   :  { %1320 = vmatprep.subr.bf16.mxu1 %v3050_v18 }
0x1358   :  { %1321 = vmatpush1.bf16.msra.mxu1 %v3056_v49 }
0x1359   :  { %1322 = vmatprep.subr.bf16.mxu1 %v3059_v59 }
0x135c   :  { %1323 = vmatpush1.bf16.msra.mxu1 %v3061_v60 }
0x135d   :  { %1420 = vmatprep.subr.bf16.mxu1 %v3039_v45 }
0x135f   :  { %1341 = vmatmul.mubr.bf16.vlgmr.msra.gmra.mxu1 %v2721_v0 }
0x1360   :  { %1421 = vmatpush1.bf16.msra.mxu1 %v3041_v7  ;;  %1444 = vmatprep.mubr.bf16.mxu1 %v2721_v0 }
0x1361   :  { %1422 = vmatprep.subr.bf16.mxu1 %v3044_v8 }
0x1364   :  { %1423 = vmatpush1.bf16.msra.mxu1 %v3047_v13 }
0x1365   :  { %1424 = vmatprep.subr.bf16.mxu1 %v3050_v18 }
0x1368   :  { %1425 = vmatpush1.bf16.msra.mxu1 %v3056_v49 }
0x1369   :  { %1426 = vmatprep.subr.bf16.mxu1 %v3059_v59 }
0x136c   :  { %1427 = vmatpush1.bf16.msra.mxu1 %v3061_v60 }
0x136d   :  { %1628 = vmatprep.subr.bf16.mxu1 %v3039_v45 }
0x140f   :  { %v1038_v58 = vpop.f32.mrf.mxu1 }
0x1410   :  { %v1045_v12 = vadd.f32 %v1038_v58, %v2863_v15 }
0x1411   :  { %v1040_v56 = vpop.f32.mrf.mxu1 }
0x1412   :  { %2492 = vtanh.f32 %v1045_v12  ;;  %v1070_v3 = vadd.f32 %v1040_v56, %v2836_v40  ;;  %v2249_v50 = vmul.f32 -1.442695, %v1045_v12 }
0x1413   :  { %v1042_v16 = vpop.f32.mrf.mxu1 }
0x1414   :  { %2494 = vtanh.f32 %v1070_v3  ;;  %v2250_v21 = vmul.f32 -1.442695, %v1070_v3  ;;  %v1100_v3 = vsel %vm374_vm1, %v2899_v38, %v3026_v1  ;;  %v1102_v38 = vsel %vm374_vm1, %v2953_v27, %v2981_v25 }
0x1415   :  { %v1043_v54 = vpop.f32.mrf.mxu1  ;;  %2496 = vpow2.f32 %v2249_v50  ;;  %v1103_v27 = vsel %vm374_vm1, %v2979_v23, %v2955_v32 }
0x1416   :  { %2498 = vpow2.f32 %v2250_v21  ;;  %v2251_v21 = vld [vmem:[%s3307_s3 + $0x1] ss:$2 sm:$0x3] }
0x141f   :  { %v2493_v17 = vpop.eup %2492  ;;  %v1342_v32 = vpop.f32.mrf.mxu1 }
0x1420   :  { %1055 = vrot.lane.b32.xlu1 %v2493_v17, %s2722_s13  ;;  %v1101_v17 = vsel %vm374_vm1, %v2926_v34, %v3007_v20  ;;  %v1104_v34 = vsel %vm374_vm1, %v3005_v19, %v2928_v37  ;;  %v1105_v37 = vsel %vm374_vm1, %v3024_v62, %v2901_v43  ;;  %v1141_v62 = vrot.slane %v2251_v21, %v102_v33 }
0x1421   :  { %v2495_v61 = vpop.eup %2494  ;;  %v1131_v25 = vpack.c.bf16 %v1104_v34, %v1103_v27  ;;  %v1344_v23 = vpop.f32.mrf.mxu1 }
0x1422   :  { %1080 = vrot.lane.b32.xlu0 %v2495_v61, %s2722_s13  ;;  %v2497_v2 = vpop.eup %2496 }
0x1423   :  { %v2499_v22 = vpop.eup %2498  ;;  %v1049_v15 = vadd.f32 1.0, %v2497_v2  ;;  %v1346_v61 = vpop.f32.mrf.mxu1 }
0x1424   :  { %v1074_v44 = vadd.f32 1.0, %v2499_v22 }
0x1425   :  { %2500 = vrcp.f32 %v1049_v15  ;;  %v1347_v50 = vpop.f32.mrf.mxu1 }
0x1426   :  { %2502 = vrcp.f32 %v1074_v44 }
0x1432   :  { %v2501_v40 = vpop.eup %2500 }
0x1433   :  { %v2503_v26 = vpop.eup %2502  ;;  %v1053_v35 = vmul.f32 %v2501_v40, %v959_v14  ;;  %v2366_v14 = vld [vmem:[#allocation5 + $0x54] ss:$8 sps:$4 sm:$0xff]  }
0x1434   :  { %v1078_v41 = vmul.f32 %v2503_v26, %v984_v48  ;;  %v2364_v48 = vld [vmem:[#allocation5 + $0x50] ss:$8 sps:$4 sm:$0xff]   ;;  %1208 = vmatprep.subr.bf16.mxu0 %v2366_v14 }
0x1435   :  { %1209 = vmatpush1.bf16.msra.mxu0 %v2364_v48 }
0x1436   :  { %1210 = vmatprep.subr.bf16.mxu0 %v2372_v51 }
0x1439   :  { %1211 = vmatpush1.bf16.msra.mxu0 %v2370_v57 }
0x143a   :  { %1524 = vmatprep.subr.bf16.mxu0 %v3039_v45 }
0x1492   :  { %v1056_v10 = vpop.permute.xlu1 %1055 }
0x1493   :  { %v1058_v24 = vmul.f32 %v2501_v40, %v1056_v10 }
0x1494   :  { %v1081_v28 = vpop.permute.xlu0 %1080 }
0x1495   :  { %1060 = vrot.lane.b32.xlu1 %v1058_v24, %s2723_s14  ;;  %v1083_v29 = vmul.f32 %v2503_v26, %v1081_v28 }
0x1497   :  { %1085 = vrot.lane.b32.xlu0 %v1083_v29, %s2723_s14 }
0x1507   :  { %v1061_v36 = vpop.permute.xlu1 %1060 }
0x1508   :  { %v1063_v39 = vadd.f32 %v1061_v36, %v1053_v35 }
0x1509   :  { %v1086_v6 = vpop.permute.xlu0 %1085 }
0x150a   :  { %2504 = vtanh.f32 %v1063_v39  ;;  %v1088_v42 = vadd.f32 %v1086_v6, %v1078_v41 }
0x150c   :  { %2506 = vtanh.f32 %v1088_v42 }
0x1517   :  { %v2505_v63 = vpop.eup %2504 }
0x1518   :  { %1066 = vrot.lane.b32.xlu1 %v2505_v63, %s2722_s13 }
0x1519   :  { %v2507_v52 = vpop.eup %2506 }
0x151a   :  { %1091 = vrot.lane.b32.xlu0 %v2507_v52, %s2722_s13 }
0x158a   :  { %v1067_v5 = vpop.permute.xlu1 %1066 }
0x158b   :  { %v1069_v9 = vmul.f32 %v2501_v40, %v1067_v5 }
0x158c   :  { %v1092_v58 = vpop.permute.xlu0 %1091 }
0x158d   :  { %1107 = vrot.lane.b32.xlu1 %v1069_v9, %s2723_s14  ;;  %v1094_v12 = vmul.f32 %v2503_v26, %v1092_v58 }
0x158f   :  { %1096 = vrot.lane.b32.xlu0 %v1094_v12, %s2722_s13 }
0x15ff   :  { %v1108_v20 = vpop.permute.xlu1 %1107 }
0x1600   :  { %v1110_v1 = vsel %vm374_vm1, %v1108_v20, %v2874_v55  ;;  %v1137_v55 = vrot.slane %v2251_v21, %v98_v31 }
0x1601   :  { %v1097_v56 = vpop.permute.xlu0 %1096  ;;  %v1132_v19 = vpack.c.bf16 %v1110_v1, %v1105_v37 }
0x1602   :  { %v1099_v16 = vsel %vm374_vm1, %v2872_v53, %v1097_v56  ;;  %v1130_v53 = vpack.c.bf16 %v1102_v38, %v1101_v17 }
0x1603   :  { %v1129_v54 = vpack.c.bf16 %v1100_v3, %v1099_v16 }
0x1605   :  { %2260 = vmatmul.mubr.msk.bf16.vlgmr.msra.gmra.mxu0 %vm146_vm0, %v1129_v54 }
0x1606   :  { %1237 = vmatprep.mubr.bf16.mxu0 %v2721_v0  ;;  %1525 = vmatpush1.bf16.msra.mxu0 %v3041_v7 }
0x1607   :  { %1526 = vmatprep.subr.bf16.mxu0 %v3044_v8 }
0x160a   :  { %1527 = vmatpush1.bf16.msra.mxu0 %v3047_v13 }
0x160b   :  { %1528 = vmatprep.subr.bf16.mxu0 %v3050_v18 }
0x160d   :  { %2261 = vmatmul.mubr.msk.bf16.gmra.mxu0 %vm146_vm0, %v1130_v53 }
0x160e   :  { %1247 = vmatprep.mubr.bf16.mxu0 %v2721_v0  ;;  %1529 = vmatpush1.bf16.msra.mxu0 %v3056_v49 }
0x160f   :  { %1530 = vmatprep.subr.bf16.mxu0 %v3059_v59 }
0x1612   :  { %1531 = vmatpush1.bf16.msra.mxu0 %v3061_v60 }
0x1613   :  { %1732 = vmatprep.subr.bf16.mxu0 %v3039_v45 }
0x1615   :  { %2262 = vmatmul.mubr.msk.bf16.gmra.mxu0 %vm146_vm0, %v1131_v25 }
0x1616   :  { %1257 = vmatprep.mubr.bf16.mxu0 %v2721_v0 }
0x161d   :  { %2263 = vmatmul.mubr.msk.bf16.gmra.mxu0 %vm146_vm0, %v1132_v19 }
0x161e   :  { %1548 = vmatprep.mubr.bf16.mxu0 %v2721_v0 }
0x16c5   :  { %v1230_v2 = vpop.f32.mrf.mxu0 }
0x16c6   :  { %v1231_v22 = vadd.f32 %v1230_v2, %v1137_v55 }
0x16c7   :  { %v1232_v15 = vpop.f32.mrf.mxu0 }
0x16c8   :  { %v1349_v43 = vadd.f32 %v1342_v32, %v1231_v22 }
0x16c9   :  { %v1233_v44 = vpop.f32.mrf.mxu0 }
0x16ca   :  { %2508 = vtanh.f32 %v1349_v43  ;;  %v3124_v40 = vadd.f32 %v1233_v44, %v1137_v55  ;;  %v2272_v3 = vmul.f32 -1.442695, %v1349_v43 }
0x16cb   :  { %v1235_v10 = vpop.f32.mrf.mxu0 }
0x16cc   :  { %v3126_v24 = vadd.f32 %v1235_v10, %v1141_v62 }
0x16cd   :  { %v1239_v26 = vpop.f32.mrf.mxu0 }
0x16ce   :  { %v3128_v28 = vadd.f32 %v1239_v26, %v1137_v55 }
0x16cf   :  { %v1241_v29 = vpop.f32.mrf.mxu0 }
0x16d0   :  { %v3130_v35 = vadd.f32 %v1241_v29, %v1141_v62 }
0x16d1   :  { %v1243_v31 = vpop.f32.mrf.mxu0 }
0x16d2   :  { %v3132_v36 = vadd.f32 %v1243_v31, %v1137_v55 }
0x16d3   :  { %v1245_v39 = vpop.f32.mrf.mxu0 }
0x16d4   :  { %v3134_v41 = vadd.f32 %v1245_v39, %v1141_v62 }
0x16d5   :  { %v1249_v30 = vpop.f32.mrf.mxu0 }
0x16d6   :  { %v3136_v33 = vadd.f32 %v1249_v30, %v1137_v55 }
0x16d7   :  { %v2509_v6 = vpop.eup %2508  ;;  %v1251_v42 = vpop.f32.mrf.mxu0 }
0x16d8   :  { %v3138_v47 = vadd.f32 %v1251_v42, %v1141_v62  ;;  %1359 = vrot.lane.b32.xlu0 %v2509_v6, %s2722_s13 }
0x16d9   :  { %v1253_v4 = vpop.f32.mrf.mxu0 }
0x16da   :  { %v3141_v46 = vadd.f32 %v1253_v4, %v1137_v55 }
0x16db   :  { %v1255_v11 = vpop.f32.mrf.mxu0 }
0x16dc   :  { %v3143_v14 = vadd.f32 %v1255_v11, %v1141_v62 }
0x16dd   :  { %v1259_v63 = vpop.f32.mrf.mxu0 }
0x16de   :  { %v3145_v48 = vadd.f32 %v1259_v63, %v1137_v55 }
0x16df   :  { %v1261_v52 = vpop.f32.mrf.mxu0 }
0x16e0   :  { %v3147_v51 = vadd.f32 %v1261_v52, %v1141_v62 }
0x16e1   :  { %v1263_v57 = vpop.f32.mrf.mxu0 }
0x16e2   :  { %v3149_v5 = vadd.f32 %v1263_v57, %v1137_v55 }
0x16e3   :  { %v1265_v9 = vpop.f32.mrf.mxu0 }
0x16e4   :  { %v1266_v58 = vadd.f32 %v1265_v9, %v1141_v62 }
0x16e6   :  { %v1374_v12 = vadd.f32 %v1344_v23, %v1266_v58 }
0x16e8   :  { %2510 = vtanh.f32 %v1374_v12  ;;  %v2273_v17 = vmul.f32 -1.442695, %v1374_v12 }
0x16e9   :  { %2512 = vpow2.f32 %v2272_v3 }
0x16f5   :  { %v2511_v56 = vpop.eup %2510 }
0x16f6   :  { %1384 = vrot.lane.b32.xlu1 %v2511_v56, %s2722_s13  ;;  %v2513_v16 = vpop.eup %2512 }
0x16f7   :  { %v1353_v54 = vadd.f32 1.0, %v2513_v16 }
0x16f9   :  { %2514 = vrcp.f32 %v1353_v54 }
0x16fa   :  { %2516 = vpow2.f32 %v2273_v17 }
0x1706   :  { %v2515_v38 = vpop.eup %2514 }
0x1707   :  { %v2517_v27 = vpop.eup %2516  ;;  %v1357_v19 = vmul.f32 0.0, %v2515_v38 }
0x1708   :  { %v1378_v25 = vadd.f32 1.0, %v2517_v27 }
0x170a   :  { %2518 = vrcp.f32 %v1378_v25 }
0x1717   :  { %v2519_v20 = vpop.eup %2518 }
0x1718   :  { %v1382_v50 = vmul.f32 0.0, %v2519_v20 }
0x174a   :  { %v1360_v53 = vpop.permute.xlu0 %1359 }
0x174b   :  { %v1362_v34 = vmul.f32 %v2515_v38, %v1360_v53 }
0x174d   :  { %1364 = vrot.lane.b32.xlu0 %v1362_v34, %s2723_s14 }
0x1768   :  { %v1385_v1 = vpop.permute.xlu1 %1384 }
0x1769   :  { %v1387_v37 = vmul.f32 %v2519_v20, %v1385_v1 }
0x176b   :  { %1389 = vrot.lane.b32.xlu1 %v1387_v37, %s2723_s14 }
0x17bf   :  { %v1365_v32 = vpop.permute.xlu0 %1364 }
0x17c0   :  { %v1367_v23 = vadd.f32 %v1365_v32, %v1357_v19 }
0x17c2   :  { %2520 = vtanh.f32 %v1367_v23 }
0x17cf   :  { %v2521_v61 = vpop.eup %2520 }
0x17d0   :  { %1370 = vrot.lane.b32.xlu0 %v2521_v61, %s2722_s13 }
0x17dd   :  { %v1390_v21 = vpop.permute.xlu1 %1389 }
0x17de   :  { %v1392_v55 = vadd.f32 %v1390_v21, %v1382_v50 }
0x17e0   :  { %2522 = vtanh.f32 %v1392_v55 }
0x17ed   :  { %v2523_v2 = vpop.eup %2522 }
0x17ee   :  { %1395 = vrot.lane.b32.xlu1 %v2523_v2, %s2722_s13 }
0x1842   :  { %v1371_v22 = vpop.permute.xlu0 %1370 }
0x1843   :  { %v1373_v15 = vmul.f32 %v2515_v38, %v1371_v22 }
0x1845   :  { %1400 = vrot.lane.b32.xlu0 %v1373_v15, %s2723_s14 }
0x1860   :  { %v1396_v43 = vpop.permute.xlu1 %1395 }
0x1861   :  { %v1398_v62 = vmul.f32 %v2519_v20, %v1396_v43 }
0x1863   :  { %1404 = vrot.lane.b32.xlu1 %v1398_v62, %s2722_s13 }
0x18b7   :  { %v1401_v44 = vpop.permute.xlu0 %1400 }
0x18d5   :  { %v3158_v10 = vpop.permute.xlu1 %1404 }
0x18d6   :  { %v1407_v26 = vsel %vm374_vm1, %v1401_v44, %v3158_v10 }
0x18d7   :  { %v1408_v29 = vpack.c.bf16 %v1407_v26, %v1407_v26 }
0x18d9   :  { %2274 = vmatmul.mubr.msk.bf16.vlgmr.msra.gmra.mxu1 %vm146_vm0, %v1408_v29 }
0x18da   :  { %1629 = vmatpush1.bf16.msra.mxu1 %v3041_v7  ;;  %1652 = vmatprep.mubr.bf16.mxu1 %v2721_v0 }
0x18db   :  { %1630 = vmatprep.subr.bf16.mxu1 %v3044_v8 }
0x18de   :  { %1631 = vmatpush1.bf16.msra.mxu1 %v3047_v13 }
0x18df   :  { %1632 = vmatprep.subr.bf16.mxu1 %v3050_v18 }
0x18e2   :  { %1633 = vmatpush1.bf16.msra.mxu1 %v3056_v49 }
0x18e3   :  { %1634 = vmatprep.subr.bf16.mxu1 %v3059_v59 }
0x18e6   :  { %1635 = vmatpush1.bf16.msra.mxu1 %v3061_v60 }
0x18e7   :  { %1836 = vmatprep.subr.bf16.mxu1 %v3039_v45 }
0x1999   :  { %v1446_v31 = vpop.f32.mrf.mxu1 }
0x199a   :  { %v1453_v39 = vadd.f32 %v1446_v31, %v3124_v40 }
0x199b   :  { %v1448_v30 = vpop.f32.mrf.mxu1 }
0x199c   :  { %2524 = vtanh.f32 %v1453_v39  ;;  %v1478_v6 = vadd.f32 %v1448_v30, %v3147_v51  ;;  %v2275_v52 = vmul.f32 -1.442695, %v1453_v39 }
0x199d   :  { %v1450_v42 = vpop.f32.mrf.mxu1 }
0x199e   :  { %2526 = vtanh.f32 %v1478_v6  ;;  %v2276_v57 = vmul.f32 -1.442695, %v1478_v6 }
0x199f   :  { %v1451_v4 = vpop.f32.mrf.mxu1  ;;  %2528 = vpow2.f32 %v2275_v52 }
0x19a0   :  { %2530 = vpow2.f32 %v2276_v57 }
0x19a9   :  { %v2525_v11 = vpop.eup %2524 }
0x19aa   :  { %1463 = vrot.lane.b32.xlu0 %v2525_v11, %s2722_s13 }
0x19ab   :  { %v2527_v63 = vpop.eup %2526 }
0x19ac   :  { %1488 = vrot.lane.b32.xlu1 %v2527_v63, %s2722_s13  ;;  %v2529_v9 = vpop.eup %2528 }
0x19ad   :  { %v2531_v58 = vpop.eup %2530  ;;  %v1457_v40 = vadd.f32 1.0, %v2529_v9 }
0x19ae   :  { %v1482_v12 = vadd.f32 1.0, %v2531_v58 }
0x19af   :  { %2532 = vrcp.f32 %v1457_v40 }
0x19b0   :  { %2534 = vrcp.f32 %v1482_v12 }
0x19bc   :  { %v2533_v51 = vpop.eup %2532 }
0x19bd   :  { %v2535_v16 = vpop.eup %2534  ;;  %v1461_v38 = vmul.f32 %v2533_v51, %v1367_v23 }
0x19be   :  { %v1486_v27 = vmul.f32 %v2535_v16, %v1392_v55 }
0x1a1c   :  { %v1464_v56 = vpop.permute.xlu0 %1463 }
0x1a1d   :  { %v1466_v3 = vmul.f32 %v2533_v51, %v1464_v56 }
0x1a1e   :  { %v1489_v54 = vpop.permute.xlu1 %1488 }
0x1a1f   :  { %1468 = vrot.lane.b32.xlu0 %v1466_v3, %s2723_s14  ;;  %v1491_v17 = vmul.f32 %v2535_v16, %v1489_v54 }
0x1a21   :  { %1493 = vrot.lane.b32.xlu1 %v1491_v17, %s2723_s14 }
0x1a91   :  { %v1469_v53 = vpop.permute.xlu0 %1468 }
0x1a92   :  { %v1471_v34 = vadd.f32 %v1469_v53, %v1461_v38 }
0x1a93   :  { %v1494_v25 = vpop.permute.xlu1 %1493 }
0x1a94   :  { %2536 = vtanh.f32 %v1471_v34  ;;  %v1496_v20 = vadd.f32 %v1494_v25, %v1486_v27 }
0x1a96   :  { %2538 = vtanh.f32 %v1496_v20 }
0x1aa1   :  { %v2537_v1 = vpop.eup %2536 }
0x1aa2   :  { %1474 = vrot.lane.b32.xlu0 %v2537_v1, %s2722_s13 }
0x1aa3   :  { %v2539_v37 = vpop.eup %2538 }
0x1aa4   :  { %1499 = vrot.lane.b32.xlu1 %v2539_v37, %s2722_s13 }
0x1b14   :  { %v1475_v19 = vpop.permute.xlu0 %1474 }
0x1b15   :  { %v1477_v32 = vmul.f32 %v2533_v51, %v1475_v19 }
0x1b16   :  { %v1500_v61 = vpop.permute.xlu1 %1499 }
0x1b17   :  { %1504 = vrot.lane.b32.xlu0 %v1477_v32, %s2723_s14  ;;  %v1502_v50 = vmul.f32 %v2535_v16, %v1500_v61 }
0x1b19   :  { %1508 = vrot.lane.b32.xlu1 %v1502_v50, %s2722_s13 }
0x1b89   :  { %v1505_v23 = vpop.permute.xlu0 %1504 }
0x1b8b   :  { %v1509_v21 = vpop.permute.xlu1 %1508 }
0x1b8c   :  { %v1511_v55 = vsel %vm374_vm1, %v1505_v23, %v1509_v21 }
0x1b8d   :  { %v1512_v2 = vpack.c.bf16 %v1511_v55, %v1511_v55 }
0x1b8f   :  { %2277 = vmatmul.mubr.msk.bf16.vlgmr.msra.gmra.mxu0 %vm146_vm0, %v1512_v2 }
0x1b90   :  { %1733 = vmatpush1.bf16.msra.mxu0 %v3041_v7  ;;  %1756 = vmatprep.mubr.bf16.mxu0 %v2721_v0 }
0x1b91   :  { %1734 = vmatprep.subr.bf16.mxu0 %v3044_v8 }
0x1b94   :  { %1735 = vmatpush1.bf16.msra.mxu0 %v3047_v13 }
0x1b95   :  { %1736 = vmatprep.subr.bf16.mxu0 %v3050_v18 }
0x1b98   :  { %1737 = vmatpush1.bf16.msra.mxu0 %v3056_v49 }
0x1b99   :  { %1738 = vmatprep.subr.bf16.mxu0 %v3059_v59 }
0x1b9c   :  { %1739 = vmatpush1.bf16.msra.mxu0 %v3061_v60 }
0x1b9d   :  { %1940 = vmatprep.subr.bf16.mxu0 %v3039_v45 }
0x1c4f   :  { %v1550_v22 = vpop.f32.mrf.mxu0 }
0x1c50   :  { %v1557_v15 = vadd.f32 %v1550_v22, %v3128_v28 }
0x1c51   :  { %v1552_v43 = vpop.f32.mrf.mxu0 }
0x1c52   :  { %2540 = vtanh.f32 %v1557_v15  ;;  %v1582_v62 = vadd.f32 %v1552_v43, %v3143_v14  ;;  %v2278_v39 = vmul.f32 -1.442695, %v1557_v15 }
0x1c53   :  { %v1554_v44 = vpop.f32.mrf.mxu0 }
0x1c54   :  { %2542 = vtanh.f32 %v1582_v62  ;;  %v2279_v30 = vmul.f32 -1.442695, %v1582_v62 }
0x1c55   :  { %v1555_v26 = vpop.f32.mrf.mxu0  ;;  %2544 = vpow2.f32 %v2278_v39 }
0x1c56   :  { %2546 = vpow2.f32 %v2279_v30 }
0x1c5f   :  { %v2541_v29 = vpop.eup %2540 }
0x1c60   :  { %1567 = vrot.lane.b32.xlu0 %v2541_v29, %s2722_s13 }
0x1c61   :  { %v2543_v31 = vpop.eup %2542 }
0x1c62   :  { %1592 = vrot.lane.b32.xlu1 %v2543_v31, %s2722_s13  ;;  %v2545_v6 = vpop.eup %2544 }
0x1c63   :  { %v2547_v42 = vpop.eup %2546  ;;  %v1561_v28 = vadd.f32 1.0, %v2545_v6 }
0x1c64   :  { %v1586_v4 = vadd.f32 1.0, %v2547_v42 }
0x1c65   :  { %2548 = vrcp.f32 %v1561_v28 }
0x1c66   :  { %2550 = vrcp.f32 %v1586_v4 }
0x1c72   :  { %v2549_v14 = vpop.eup %2548 }
0x1c73   :  { %v2551_v52 = vpop.eup %2550  ;;  %v1565_v58 = vmul.f32 %v2549_v14, %v1471_v34 }
0x1c74   :  { %v1590_v51 = vmul.f32 %v2551_v52, %v1496_v20 }
0x1cd2   :  { %v1568_v11 = vpop.permute.xlu0 %1567 }
0x1cd3   :  { %v1570_v63 = vmul.f32 %v2549_v14, %v1568_v11 }
0x1cd4   :  { %v1593_v57 = vpop.permute.xlu1 %1592 }
0x1cd5   :  { %1572 = vrot.lane.b32.xlu0 %v1570_v63, %s2723_s14  ;;  %v1595_v9 = vmul.f32 %v2551_v52, %v1593_v57 }
0x1cd7   :  { %1597 = vrot.lane.b32.xlu1 %v1595_v9, %s2723_s14 }
0x1d47   :  { %v1573_v40 = vpop.permute.xlu0 %1572 }
0x1d48   :  { %v1575_v12 = vadd.f32 %v1573_v40, %v1565_v58 }
0x1d49   :  { %v1598_v56 = vpop.permute.xlu1 %1597 }
0x1d4a   :  { %2552 = vtanh.f32 %v1575_v12  ;;  %v1600_v3 = vadd.f32 %v1598_v56, %v1590_v51 }
0x1d4c   :  { %2554 = vtanh.f32 %v1600_v3 }
0x1d57   :  { %v2553_v16 = vpop.eup %2552 }
0x1d58   :  { %1578 = vrot.lane.b32.xlu0 %v2553_v16, %s2722_s13 }
0x1d59   :  { %v2555_v54 = vpop.eup %2554 }
0x1d5a   :  { %1603 = vrot.lane.b32.xlu1 %v2555_v54, %s2722_s13 }
0x1dca   :  { %v1579_v17 = vpop.permute.xlu0 %1578 }
0x1dcb   :  { %v1581_v38 = vmul.f32 %v2549_v14, %v1579_v17 }
0x1dcc   :  { %v1604_v53 = vpop.permute.xlu1 %1603 }
0x1dcd   :  { %1608 = vrot.lane.b32.xlu0 %v1581_v38, %s2723_s14  ;;  %v1606_v27 = vmul.f32 %v2551_v52, %v1604_v53 }
0x1dcf   :  { %1612 = vrot.lane.b32.xlu1 %v1606_v27, %s2722_s13 }
0x1e3f   :  { %v1609_v34 = vpop.permute.xlu0 %1608 }
0x1e41   :  { %v1613_v25 = vpop.permute.xlu1 %1612 }
0x1e42   :  { %v1615_v20 = vsel %vm374_vm1, %v1609_v34, %v1613_v25 }
0x1e43   :  { %v1616_v1 = vpack.c.bf16 %v1615_v20, %v1615_v20 }
0x1e45   :  { %2280 = vmatmul.mubr.msk.bf16.vlgmr.msra.gmra.mxu1 %vm146_vm0, %v1616_v1 }
0x1e46   :  { %1837 = vmatpush1.bf16.msra.mxu1 %v3041_v7  ;;  %1860 = vmatprep.mubr.bf16.mxu1 %v2721_v0 }
0x1e47   :  { %1838 = vmatprep.subr.bf16.mxu1 %v3044_v8 }
0x1e4a   :  { %1839 = vmatpush1.bf16.msra.mxu1 %v3047_v13 }
0x1e4b   :  { %1840 = vmatprep.subr.bf16.mxu1 %v3050_v18 }
0x1e4e   :  { %1841 = vmatpush1.bf16.msra.mxu1 %v3056_v49 }
0x1e4f   :  { %1842 = vmatprep.subr.bf16.mxu1 %v3059_v59 }
0x1e52   :  { %1843 = vmatpush1.bf16.msra.mxu1 %v3061_v60 }
0x1e53   :  { %2044 = vmatprep.subr.bf16.mxu1 %v3039_v45 }
0x1f05   :  { %v1654_v37 = vpop.f32.mrf.mxu1 }
0x1f06   :  { %v1661_v19 = vadd.f32 %v1654_v37, %v3132_v36 }
0x1f07   :  { %v1656_v32 = vpop.f32.mrf.mxu1 }
0x1f08   :  { %2556 = vtanh.f32 %v1661_v19  ;;  %v1686_v61 = vadd.f32 %v1656_v32, %v3138_v47  ;;  %v2281_v2 = vmul.f32 -1.442695, %v1661_v19 }
0x1f09   :  { %v1658_v50 = vpop.f32.mrf.mxu1 }
0x1f0a   :  { %2558 = vtanh.f32 %v1686_v61  ;;  %v2282_v22 = vmul.f32 -1.442695, %v1686_v61 }
0x1f0b   :  { %v1659_v23 = vpop.f32.mrf.mxu1  ;;  %2560 = vpow2.f32 %v2281_v2 }
0x1f0c   :  { %2562 = vpow2.f32 %v2282_v22 }
0x1f15   :  { %v2557_v21 = vpop.eup %2556 }
0x1f16   :  { %1671 = vrot.lane.b32.xlu0 %v2557_v21, %s2722_s13 }
0x1f17   :  { %v2559_v55 = vpop.eup %2558 }
0x1f18   :  { %1696 = vrot.lane.b32.xlu1 %v2559_v55, %s2722_s13  ;;  %v2561_v45 = vpop.eup %2560 }
0x1f19   :  { %v2563_v15 = vpop.eup %2562  ;;  %v1665_v36 = vadd.f32 1.0, %v2561_v45 }
0x1f1a   :  { %v1690_v43 = vadd.f32 1.0, %v2563_v15 }
0x1f1b   :  { %2564 = vrcp.f32 %v1665_v36 }
0x1f1c   :  { %2566 = vrcp.f32 %v1690_v43 }
0x1f28   :  { %v2565_v47 = vpop.eup %2564 }
0x1f29   :  { %v2567_v26 = vpop.eup %2566  ;;  %v1669_v39 = vmul.f32 %v2565_v47, %v1575_v12 }
0x1f2a   :  { %v1694_v42 = vmul.f32 %v2567_v26, %v1600_v3 }
0x1f88   :  { %v1672_v62 = vpop.permute.xlu0 %1671 }
0x1f89   :  { %v1674_v44 = vmul.f32 %v2565_v47, %v1672_v62 }
0x1f8a   :  { %v1697_v29 = vpop.permute.xlu1 %1696 }
0x1f8b   :  { %1676 = vrot.lane.b32.xlu0 %v1674_v44, %s2723_s14  ;;  %v1699_v31 = vmul.f32 %v2567_v26, %v1697_v29 }
0x1f8d   :  { %1701 = vrot.lane.b32.xlu1 %v1699_v31, %s2723_s14 }
0x1ffd   :  { %v1677_v30 = vpop.permute.xlu0 %1676 }
0x1ffe   :  { %v1679_v6 = vadd.f32 %v1677_v30, %v1669_v39 }
0x1fff   :  { %v1702_v28 = vpop.permute.xlu1 %1701 }
0x2000   :  { %2568 = vtanh.f32 %v1679_v6  ;;  %v1704_v4 = vadd.f32 %v1702_v28, %v1694_v42 }
0x2002   :  { %2570 = vtanh.f32 %v1704_v4 }
0x200d   :  { %v2569_v14 = vpop.eup %2568 }
0x200e   :  { %1682 = vrot.lane.b32.xlu0 %v2569_v14, %s2722_s13 }
0x200f   :  { %v2571_v11 = vpop.eup %2570 }
0x2010   :  { %1707 = vrot.lane.b32.xlu1 %v2571_v11, %s2722_s13 }
0x2080   :  { %v1683_v63 = vpop.permute.xlu0 %1682 }
0x2081   :  { %v1685_v52 = vmul.f32 %v2565_v47, %v1683_v63 }
0x2082   :  { %v1708_v57 = vpop.permute.xlu1 %1707 }
0x2083   :  { %1712 = vrot.lane.b32.xlu0 %v1685_v52, %s2723_s14  ;;  %v1710_v9 = vmul.f32 %v2567_v26, %v1708_v57 }
0x2085   :  { %1716 = vrot.lane.b32.xlu1 %v1710_v9, %s2722_s13 }
0x20f5   :  { %v1713_v58 = vpop.permute.xlu0 %1712 }
0x20f7   :  { %v1717_v40 = vpop.permute.xlu1 %1716 }
0x20f8   :  { %v1719_v12 = vsel %vm374_vm1, %v1713_v58, %v1717_v40 }
0x20f9   :  { %v1720_v51 = vpack.c.bf16 %v1719_v12, %v1719_v12 }
0x20fb   :  { %2283 = vmatmul.mubr.msk.bf16.vlgmr.msra.gmra.mxu0 %vm146_vm0, %v1720_v51 }
0x20fc   :  { %1941 = vmatpush1.bf16.msra.mxu0 %v3041_v7  ;;  %1964 = vmatprep.mubr.bf16.mxu0 %v2721_v0 }
0x20fd   :  { %1942 = vmatprep.subr.bf16.mxu0 %v3044_v8 }
0x2100   :  { %1943 = vmatpush1.bf16.msra.mxu0 %v3047_v13 }
0x2101   :  { %1944 = vmatprep.subr.bf16.mxu0 %v3050_v18 }
0x2104   :  { %1945 = vmatpush1.bf16.msra.mxu0 %v3056_v49 }
0x2105   :  { %1946 = vmatprep.subr.bf16.mxu0 %v3059_v59 }
0x2108   :  { %1947 = vmatpush1.bf16.msra.mxu0 %v3061_v60 }
0x21bb   :  { %v1758_v56 = vpop.f32.mrf.mxu0 }
0x21bc   :  { %v1765_v3 = vadd.f32 %v1758_v56, %v3136_v33 }
0x21bd   :  { %v1760_v16 = vpop.f32.mrf.mxu0 }
0x21be   :  { %2572 = vtanh.f32 %v1765_v3  ;;  %v1790_v54 = vadd.f32 %v1760_v16, %v3134_v41  ;;  %v2284_v34 = vmul.f32 -1.442695, %v1765_v3 }
0x21bf   :  { %v1762_v17 = vpop.f32.mrf.mxu0 }
0x21c0   :  { %2574 = vtanh.f32 %v1790_v54  ;;  %v2285_v25 = vmul.f32 -1.442695, %v1790_v54 }
0x21c1   :  { %v1763_v38 = vpop.f32.mrf.mxu0  ;;  %2576 = vpow2.f32 %v2284_v34 }
0x21c2   :  { %2578 = vpow2.f32 %v2285_v25 }
0x21cb   :  { %v2573_v53 = vpop.eup %2572 }
0x21cc   :  { %1775 = vrot.lane.b32.xlu0 %v2573_v53, %s2722_s13 }
0x21cd   :  { %v2575_v27 = vpop.eup %2574 }
0x21ce   :  { %1800 = vrot.lane.b32.xlu1 %v2575_v27, %s2722_s13  ;;  %v2577_v20 = vpop.eup %2576 }
0x21cf   :  { %v2579_v1 = vpop.eup %2578  ;;  %v1769_v33 = vadd.f32 1.0, %v2577_v20 }
0x21d0   :  { %v1794_v37 = vadd.f32 1.0, %v2579_v1 }
0x21d1   :  { %2580 = vrcp.f32 %v1769_v33 }
0x21d2   :  { %2582 = vrcp.f32 %v1794_v37 }
0x21de   :  { %v2581_v41 = vpop.eup %2580 }
0x21df   :  { %v2583_v61 = vpop.eup %2582  ;;  %v1773_v21 = vmul.f32 %v2581_v41, %v1679_v6 }
0x21e0   :  { %v1798_v22 = vmul.f32 %v2583_v61, %v1704_v4 }
0x223e   :  { %v1776_v19 = vpop.permute.xlu0 %1775 }
0x223f   :  { %v1778_v32 = vmul.f32 %v2581_v41, %v1776_v19 }
0x2240   :  { %v1801_v50 = vpop.permute.xlu1 %1800 }
0x2241   :  { %1780 = vrot.lane.b32.xlu0 %v1778_v32, %s2723_s14  ;;  %v1803_v23 = vmul.f32 %v2583_v61, %v1801_v50 }
0x2243   :  { %1805 = vrot.lane.b32.xlu1 %v1803_v23, %s2723_s14 }
0x22b3   :  { %v1781_v55 = vpop.permute.xlu0 %1780 }
0x22b4   :  { %v1783_v2 = vadd.f32 %v1781_v55, %v1773_v21 }
0x22b5   :  { %v1806_v45 = vpop.permute.xlu1 %1805 }
0x22b6   :  { %2584 = vtanh.f32 %v1783_v2  ;;  %v1808_v15 = vadd.f32 %v1806_v45, %v1798_v22 }
0x22b8   :  { %2586 = vtanh.f32 %v1808_v15 }
0x22c3   :  { %v2585_v36 = vpop.eup %2584 }
0x22c4   :  { %1786 = vrot.lane.b32.xlu0 %v2585_v36, %s2722_s13 }
0x22c5   :  { %v2587_v43 = vpop.eup %2586 }
0x22c6   :  { %1811 = vrot.lane.b32.xlu1 %v2587_v43, %s2722_s13 }
0x2336   :  { %v1787_v47 = vpop.permute.xlu0 %1786 }
0x2337   :  { %v1789_v62 = vmul.f32 %v2581_v41, %v1787_v47 }
0x2338   :  { %v1812_v44 = vpop.permute.xlu1 %1811 }
0x2339   :  { %1816 = vrot.lane.b32.xlu0 %v1789_v62, %s2723_s14  ;;  %v1814_v26 = vmul.f32 %v2583_v61, %v1812_v44 }
0x233b   :  { %1820 = vrot.lane.b32.xlu1 %v1814_v26, %s2722_s13 }
0x23ab   :  { %v1817_v29 = vpop.permute.xlu0 %1816 }
0x23ad   :  { %v1821_v31 = vpop.permute.xlu1 %1820 }
0x23ae   :  { %v1823_v39 = vsel %vm374_vm1, %v1817_v29, %v1821_v31 }
0x23af   :  { %v1824_v30 = vpack.c.bf16 %v1823_v39, %v1823_v39 }
0x23b1   :  { %2286 = vmatmul.mubr.msk.bf16.vlgmr.msra.gmra.mxu1 %vm146_vm0, %v1824_v30 }
0x23b2   :  { %2045 = vmatpush1.bf16.msra.mxu1 %v3041_v7  ;;  %2068 = vmatprep.mubr.bf16.mxu1 %v2721_v0 }
0x23b3   :  { %2046 = vmatprep.subr.bf16.mxu1 %v3044_v8 }
0x23b6   :  { %2047 = vmatpush1.bf16.msra.mxu1 %v3047_v13 }
0x23b7   :  { %2048 = vmatprep.subr.bf16.mxu1 %v3050_v18 }
0x23ba   :  { %2049 = vmatpush1.bf16.msra.mxu1 %v3056_v49 }
0x23bb   :  { %2050 = vmatprep.subr.bf16.mxu1 %v3059_v59 }
0x23be   :  { %2051 = vmatpush1.bf16.msra.mxu1 %v3061_v60 }
0x2471   :  { %v1862_v6 = vpop.f32.mrf.mxu1 }
0x2472   :  { %v1869_v42 = vadd.f32 %v1862_v6, %v3141_v46 }
0x2473   :  { %v1864_v28 = vpop.f32.mrf.mxu1 }
0x2474   :  { %2588 = vtanh.f32 %v1869_v42  ;;  %v1894_v7 = vadd.f32 %v1864_v28, %v3130_v35  ;;  %v2287_v18 = vmul.f32 -1.442695, %v1869_v42 }
0x2475   :  { %v1866_v0 = vpop.f32.mrf.mxu1 }
0x2476   :  { %2590 = vtanh.f32 %v1894_v7  ;;  %v2288_v49 = vmul.f32 -1.442695, %v1894_v7 }
0x2477   :  { %v1867_v8 = vpop.f32.mrf.mxu1  ;;  %2592 = vpow2.f32 %v2287_v18 }
0x2478   :  { %2594 = vpow2.f32 %v2288_v49 }
0x2481   :  { %v2589_v4 = vpop.eup %2588 }
0x2482   :  { %1879 = vrot.lane.b32.xlu0 %v2589_v4, %s2722_s13 }
0x2483   :  { %v2591_v13 = vpop.eup %2590 }
0x2484   :  { %1904 = vrot.lane.b32.xlu1 %v2591_v13, %s2722_s13  ;;  %v2593_v59 = vpop.eup %2592 }
0x2485   :  { %v2595_v60 = vpop.eup %2594  ;;  %v1873_v46 = vadd.f32 1.0, %v2593_v59 }
0x2486   :  { %v1898_v14 = vadd.f32 1.0, %v2595_v60 }
0x2487   :  { %2596 = vrcp.f32 %v1873_v46 }
0x2488   :  { %2598 = vrcp.f32 %v1898_v14 }
0x2494   :  { %v2597_v35 = vpop.eup %2596 }
0x2495   :  { %v2599_v52 = vpop.eup %2598  ;;  %v1877_v58 = vmul.f32 %v2597_v35, %v1783_v2 }
0x2496   :  { %v1902_v51 = vmul.f32 %v2599_v52, %v1808_v15 }
0x24f4   :  { %v1880_v11 = vpop.permute.xlu0 %1879 }
0x24f5   :  { %v1882_v63 = vmul.f32 %v2597_v35, %v1880_v11 }
0x24f6   :  { %v1905_v57 = vpop.permute.xlu1 %1904 }
0x24f7   :  { %1884 = vrot.lane.b32.xlu0 %v1882_v63, %s2723_s14  ;;  %v1907_v9 = vmul.f32 %v2599_v52, %v1905_v57 }
0x24f9   :  { %1909 = vrot.lane.b32.xlu1 %v1907_v9, %s2723_s14 }
0x2569   :  { %v1885_v40 = vpop.permute.xlu0 %1884 }
0x256a   :  { %v1887_v12 = vadd.f32 %v1885_v40, %v1877_v58 }
0x256b   :  { %v1910_v56 = vpop.permute.xlu1 %1909 }
0x256c   :  { %2600 = vtanh.f32 %v1887_v12  ;;  %v1912_v3 = vadd.f32 %v1910_v56, %v1902_v51  ;;  %v2376_v56 = vld [vmem:[%s3308_s4 + $0x18] sm:$0xff]  }
0x256e   :  { %2602 = vtanh.f32 %v1912_v3 }
0x2579   :  { %v2601_v16 = vpop.eup %2600 }
0x257a   :  { %1890 = vrot.lane.b32.xlu0 %v2601_v16, %s2722_s13  ;;  %v2377_v16 = vld [vmem:[%s3308_s4 + $0x10] sm:$0xff]  }
0x257b   :  { %v2603_v54 = vpop.eup %2602 }
0x257c   :  { %1915 = vrot.lane.b32.xlu1 %v2603_v54, %s2722_s13  ;;  %v2378_v54 = vld [vmem:[%s3308_s4 + $0x8] sm:$0xff]  }
0x25ec   :  { %v1891_v17 = vpop.permute.xlu0 %1890 }
0x25ed   :  { %v1893_v38 = vmul.f32 %v2597_v35, %v1891_v17 }
0x25ee   :  { %v1916_v53 = vpop.permute.xlu1 %1915 }
0x25ef   :  { %1920 = vrot.lane.b32.xlu0 %v1893_v38, %s2723_s14  ;;  %v1918_v27 = vmul.f32 %v2599_v52, %v1916_v53  ;;  %v2379_v38 = vld [vmem:[%s3308_s4] sm:$0xff]   ;;  %s2726_s4 = smov [#allocation8]  }
0x25f0   :  { %s2198_s26 = sshll.u32 %s2726_s4, 4  ;;  %s2199_s26 = int_to_ptr.vmem [resolvable:$true] %s2198_s26 }
0x25f1   :  { %1924 = vrot.lane.b32.xlu1 %v1918_v27, %s2722_s13  ;;  %s2690_s27 = scalar_lea.vmem %s2199_s26, 128  ;;  %p2695_p2 = scmp.lt.s32.totalorder %s2199_s26, %s2199_s26 }
0x25f2   :  { %p2691_p1 = scmp.ne.s32.totalorder %s2199_s26, %s2690_s27  ;;  %p2696_p3 = scmp.lt.s32.totalorder %s2690_s27, %s2690_s27 }
0x25f4   :  { %p2697_p4 = por %p2696_p3, %p2695_p2 }
0x25f6   :  { %p2698_p5 = pnand %p2697_p4, %p2691_p1 }
0x2661   :  { %v1921_v34 = vpop.permute.xlu0 %1920 }
0x2663   :  { %v1925_v25 = vpop.permute.xlu1 %1924 }
0x2664   :  { %v1927_v20 = vsel %vm374_vm1, %v1921_v34, %v1925_v25 }
0x2665   :  { %v1928_v1 = vpack.c.bf16 %v1927_v20, %v1927_v20 }
0x2667   :  { %2289 = vmatmul.mubr.msk.bf16.vlgmr.msra.gmra.mxu0 %vm146_vm0, %v1928_v1  ;;  %v2294_v1 = vld [vmem:[%s3309_s5] ss:$0 sm:$0xff] }
0x2727   :  { %v1966_v33 = vpop.f32.mrf.mxu0 }
0x2728   :  { %v1973_v37 = vadd.f32 %v1966_v33, %v3145_v48 }
0x2729   :  { %v1968_v41 = vpop.f32.mrf.mxu0 }
0x272a   :  { %2604 = vtanh.f32 %v1973_v37  ;;  %v1998_v19 = vadd.f32 %v1968_v41, %v3126_v24  ;;  %v2290_v21 = vmul.f32 -1.442695, %v1973_v37 }
0x272b   :  { %v1970_v32 = vpop.f32.mrf.mxu0 }
0x272c   :  { %2606 = vtanh.f32 %v1998_v19  ;;  %v2291_v55 = vmul.f32 -1.442695, %v1998_v19 }
0x272d   :  { %v1971_v61 = vpop.f32.mrf.mxu0  ;;  %2608 = vpow2.f32 %v2290_v21 }
0x272e   :  { %2610 = vpow2.f32 %v2291_v55 }
0x2737   :  { %v2605_v50 = vpop.eup %2604 }
0x2738   :  { %1983 = vrot.lane.b32.xlu0 %v2605_v50, %s2722_s13 }
0x2739   :  { %v2607_v23 = vpop.eup %2606 }
0x273a   :  { %2008 = vrot.lane.b32.xlu1 %v2607_v23, %s2722_s13  ;;  %v2609_v2 = vpop.eup %2608 }
0x273b   :  { %v2611_v22 = vpop.eup %2610  ;;  %v1977_v48 = vadd.f32 1.0, %v2609_v2 }
0x273c   :  { %v2002_v45 = vadd.f32 1.0, %v2611_v22 }
0x273d   :  { %2612 = vrcp.f32 %v1977_v48 }
0x273e   :  { %2614 = vrcp.f32 %v2002_v45 }
0x274a   :  { %v2613_v24 = vpop.eup %2612 }
0x274b   :  { %v2615_v43 = vpop.eup %2614  ;;  %v1981_v44 = vmul.f32 %v2613_v24, %v1887_v12 }
0x274c   :  { %v2006_v31 = vmul.f32 %v2615_v43, %v1912_v3  ;;  %v2724_v3 = vmov 0.0  }
0x274d   :  { %2305 = vmatprep.subr.bf16.mxu0 %v2724_v3  ;;  %2313 = vmatprep.mubr.msk.bf16.mxu0 %vm2725_vm2, %v2724_v3 }
0x274e   :  { %2306 = vmatpush3.bf16.msra.mxu0 %v2376_v56 }
0x274f   :  { %2307 = vmatprep.subr.bf16.mxu0 %v2724_v3 }
0x2752   :  { %2308 = vmatpush3.bf16.msra.mxu0 %v2377_v16 }
0x2753   :  { %2309 = vmatprep.subr.bf16.mxu0 %v2724_v3 }
0x2756   :  { %2310 = vmatpush3.bf16.msra.mxu0 %v2378_v54 }
0x2757   :  { %2311 = vmatprep.subr.bf16.mxu0 %v2724_v3 }
0x275a   :  { %2312 = vmatpush3.bf16.msra.mxu0 %v2379_v38 }
0x27aa   :  { %v1984_v15 = vpop.permute.xlu0 %1983 }
0x27ab   :  { %v1986_v36 = vmul.f32 %v2613_v24, %v1984_v15 }
0x27ac   :  { %v2009_v47 = vpop.permute.xlu1 %2008 }
0x27ad   :  { %1988 = vrot.lane.b32.xlu0 %v1986_v36, %s2723_s14  ;;  %v2011_v62 = vmul.f32 %v2615_v43, %v2009_v47 }
0x27af   :  { %2013 = vrot.lane.b32.xlu1 %v2011_v62, %s2723_s14 }
0x281f   :  { %v1989_v26 = vpop.permute.xlu0 %1988 }
0x2820   :  { %v1991_v29 = vadd.f32 %v1989_v26, %v1981_v44 }
0x2821   :  { %v2014_v39 = vpop.permute.xlu1 %2013 }
0x2822   :  { %2616 = vtanh.f32 %v1991_v29  ;;  %v2016_v30 = vadd.f32 %v2014_v39, %v2006_v31 }
0x2824   :  { %2618 = vtanh.f32 %v2016_v30 }
0x282f   :  { %v2617_v6 = vpop.eup %2616 }
0x2830   :  { %1994 = vrot.lane.b32.xlu0 %v2617_v6, %s2722_s13 }
0x2831   :  { %v2619_v42 = vpop.eup %2618 }
0x2832   :  { %2019 = vrot.lane.b32.xlu1 %v2619_v42, %s2722_s13 }
0x28a2   :  { %v1995_v28 = vpop.permute.xlu0 %1994 }
0x28a3   :  { %v1997_v7 = vmul.f32 %v2613_v24, %v1995_v28 }
0x28a4   :  { %v2020_v0 = vpop.permute.xlu1 %2019 }
0x28a5   :  { %2024 = vrot.lane.b32.xlu0 %v1997_v7, %s2723_s14  ;;  %v2022_v8 = vmul.f32 %v2615_v43, %v2020_v0 }
0x28a7   :  { %2028 = vrot.lane.b32.xlu1 %v2022_v8, %s2722_s13 }
0x2917   :  { %v2025_v4 = vpop.permute.xlu0 %2024 }
0x2919   :  { %v2029_v13 = vpop.permute.xlu1 %2028 }
0x291a   :  { %v2031_v18 = vsel %vm374_vm1, %v2025_v4, %v2029_v13 }
0x291b   :  { %v2032_v49 = vpack.c.bf16 %v2031_v18, %v2031_v18 }
0x291d   :  { %2292 = vmatmul.mubr.msk.bf16.vlgmr.msra.gmra.mxu1 %vm146_vm0, %v2032_v49 }
0x29dd   :  { %v2070_v59 = vpop.f32.mrf.mxu1 }
0x29de   :  { %v2076_v60 = vadd.f32 %v2070_v59, %v3149_v5 }
0x29df   :  { %v2072_v46 = vpop.f32.mrf.mxu1 }
0x29e0   :  { %2620 = vtanh.f32 %v2076_v60  ;;  %v2293_v63 = vmul.f32 -1.442695, %v2076_v60 }
0x29e1   :  { %v2073_v14 = vpop.f32.mrf.mxu1 }
0x29e2   :  { %2622 = vpow2.f32 %v2293_v63 }
0x29e3   :  { %v2074_v35 = vpop.f32.mrf.mxu1 }
0x29ed   :  { %v2621_v11 = vpop.eup %2620 }
0x29ee   :  { %2086 = vrot.lane.b32.xlu0 %v2621_v11, %s2722_s13 }
0x29ef   :  { %v2623_v52 = vpop.eup %2622 }
0x29f0   :  { %v2080_v57 = vadd.f32 1.0, %v2623_v52 }
0x29f2   :  { %2624 = vrcp.f32 %v2080_v57 }
0x29ff   :  { %v2625_v9 = vpop.eup %2624 }
0x2a00   :  { %v2084_v12 = vmul.f32 %v2625_v9, %v1991_v29 }
0x2a60   :  { %v2087_v58 = vpop.permute.xlu0 %2086 }
0x2a61   :  { %v2089_v40 = vmul.f32 %v2625_v9, %v2087_v58 }
0x2a63   :  { %2091 = vrot.lane.b32.xlu1 %v2089_v40, %s2723_s14 }
0x2ad5   :  { %v2092_v51 = vpop.permute.xlu1 %2091 }
0x2ad6   :  { %v2094_v5 = vadd.f32 %v2092_v51, %v2084_v12 }
0x2ad8   :  { %2626 = vtanh.f32 %v2094_v5 }
0x2ae5   :  { %v2627_v17 = vpop.eup %2626 }
0x2ae6   :  { %2097 = vrot.lane.b32.xlu0 %v2627_v17, %s2722_s13 }
0x2b58   :  { %v2098_v53 = vpop.permute.xlu0 %2097 }
0x2b59   :  { %v2100_v27 = vmul.f32 %v2625_v9, %v2098_v53 }
0x2b5b   :  { %2102 = vrot.lane.b32.xlu1 %v2100_v27, %s2723_s14 }
0x2bcd   :  { %v2103_v34 = vpop.permute.xlu1 %2102 }
0x2bce   :  { %v2105_v25 = vsel %vm374_vm1, %v2103_v34, %v3158_v10 }
0x2bcf   :  { %v2106_v20 = vpack.c.bf16 %v2105_v25, %v2105_v25 }
0x2bd1   :  { %2314 = vmatmul.mubr.msk.bf16.vlgmr.msra.gmra.mxu0 %vm146_vm0, %v2106_v20 }
0x2c91   :  { %v2183_v33 = vpop.f32.mrf.mxu0 }
0x2c92   :  { %v2184_v37 = vadd.f32 %v2294_v1, %v2183_v33 }
0x2c93   :  { %v2315_v41 = vpop.f32.mrf.mxu0 }
0x2c94   :  { %2628 = vtanh.f32 %v2184_v37 }
0x2c95   :  { %v2186_v19 = vpop.f32.mrf.mxu0 }
0x2c97   :  { %v2316_v32 = vpop.f32.mrf.mxu0 }
0x2ca1   :  { %v2629_v61 = vpop.eup %2628 }
0x2ca2   :  { %2191 = vst.msk [vmem:[#allocation8] sm:$0xff] %vm2190_vm3, %v2629_v61 }
0x2ca3   :  { %2701 = shalt.err (!%p2698_p5)
}
0x2ca4   :  { %2201 = dma.vmem_to_hbm [thread:$0]  %s2199_s26, 128, %s3310_s6, [#allocation4]  }
0x2ca5   :  { %2714 = dma.done.wait [#allocation4], 128  }
0x2ca6   :  { %2715 = vsyncadd [#allocation4], 4294967168 }
0x2ca7   :  { %2205 = vsyncpa [#allocation3], 1 }
0x2ca8   :  { %2206 = vsyncpa [#allocation6], 1 }
0x2ca9   :  { %2207 = vsyncpa [#allocation4], 1 }

</bundles_post_ra>
